<compile_context>
chip_gen: v7x
topology: tpu7x:2x2x1
jax: 0.10.0
libtpu: 0.0.40
codegen_flags: <defaults>
</compile_context>

<pallas_src>
import functools

import jax
import jax.numpy as jnp
from jax.experimental import pallas as pl
from jax.experimental.pallas import tpu as pltpu

# ----------------------------- hyperparameters ------------------------------
NUM_CLASSES = 4
INPUT_SIZE = 8
HIDDEN_SIZE = 32
NUM_LAYERS = 2
SEQ_LEN = 8            # gparams._SLIDING_WINDOW
BATCH = 2
BIDIRECTIONAL = True   # gparams._BIDIRECTIONAL
NUM_DIR = 2 if BIDIRECTIONAL else 1


# ------------------------- host-side weight fusion --------------------------
# Fused gate layout (width 8H): gate k in [i, f, g, o], direction d in {f, r}
# occupies columns [k*2H + d*H, k*2H + (d+1)*H).
def _fuse_ih(w_f, w_r, hidden):
    """Per-direction (4H, in) input weights -> two (in, 8H) zero-padded mats."""
    in_sz = w_f.shape[1]
    H = hidden
    a_f = jnp.zeros((in_sz, 8 * H), jnp.float32)
    a_r = jnp.zeros((in_sz, 8 * H), jnp.float32)
    for k in range(4):
        a_f = a_f.at[:, k * 2 * H: k * 2 * H + H].set(
            jnp.asarray(w_f[k * H:(k + 1) * H, :].T, jnp.float32))
        a_r = a_r.at[:, k * 2 * H + H: (k + 1) * 2 * H].set(
            jnp.asarray(w_r[k * H:(k + 1) * H, :].T, jnp.float32))
    return a_f, a_r


def _fuse_hh(w_f, w_r, hidden):
    """Per-direction (4H, H) recurrent weights -> block-structured (2H, 8H)."""
    H = hidden
    w = jnp.zeros((2 * H, 8 * H), jnp.float32)
    for k in range(4):
        w = w.at[:H, k * 2 * H: k * 2 * H + H].set(
            jnp.asarray(w_f[k * H:(k + 1) * H, :].T, jnp.float32))
        w = w.at[H:, k * 2 * H + H: (k + 1) * 2 * H].set(
            jnp.asarray(w_r[k * H:(k + 1) * H, :].T, jnp.float32))
    return w


def _fuse_bias(b_f, b_r, hidden):
    """Per-direction combined biases (4H,) -> single (1, 8H) fused bias."""
    H = hidden
    b = jnp.zeros((1, 8 * H), jnp.float32)
    for k in range(4):
        b = b.at[0, k * 2 * H: k * 2 * H + H].set(
            jnp.asarray(b_f[k * H:(k + 1) * H], jnp.float32))
        b = b.at[0, k * 2 * H + H: (k + 1) * 2 * H].set(
            jnp.asarray(b_r[k * H:(k + 1) * H], jnp.float32))
    return b


# ------------------------------ kernel helpers ------------------------------
def _fused_step(pre, h, c, hidden):
    """One fused (both directions) LSTM cell update; pre is (B, 8H)."""
    H2 = 2 * hidden
    sg = jax.nn.sigmoid(pre)          # full-tile EUP pass
    tg = jnp.tanh(pre)                # full-tile EUP pass
    i_g = sg[:, 0 * H2:1 * H2]        # [i_f | i_r]
    f_g = sg[:, 1 * H2:2 * H2]        # [f_f | f_r]
    g_g = tg[:, 2 * H2:3 * H2]        # [g_f | g_r]
    o_g = sg[:, 3 * H2:4 * H2]        # [o_f | o_r]
    c_new = f_g * c + i_g * g_g       # [c_f | c_r]
    h_new = o_g * jnp.tanh(c_new)     # [h_f | h_r]
    return h_new, c_new


def _run_fused_layer(p_fwd, p_rev, whh, *, batch, hidden, seq_len,
                     collect=True):
    """Both directions of one layer as a single fully-unrolled recurrence.

    p_fwd / p_rev: (S*B, 8H) hoisted input projections in the fused gate
    layout, rows in ORIGINAL time order (row block t*B:(t+1)*B = time t).
    Fused step s consumes fwd time s and rev time S-1-s.
    Returns (per-step h_cat list or [], final h_cat), h_cat = [h_f | h_r].
    """
    B, H, S = batch, hidden, seq_len
    h = jnp.zeros((B, 2 * H), jnp.float32)     # stateless forward: h0 = 0
    c = jnp.zeros((B, 2 * H), jnp.float32)     # c0 = 0
    steps = []
    for s in range(S):                          # static python loop -> unrolled
        tf, tr = s, S - 1 - s
        pre = (p_fwd[tf * B:(tf + 1) * B, :]
               + p_rev[tr * B:(tr + 1) * B, :]
               + jnp.dot(h, whh, preferred_element_type=jnp.float32))
        h, c = _fused_step(pre, h, c, hidden)
        if collect:
            steps.append(h)
    return steps, h


# ------------------------------ fused kernel --------------------------------
def _lstm_bibatch_kernel(x_ref,
                         a0f_ref, a0r_ref, b0_ref, whh0_ref,
                         a1f_ref, a1r_ref, b1_ref, whh1_ref,
                         wfc_ref, bfc_ref,
                         out_ref,
                         *, batch, hidden, seq_len, num_classes):
    B, H, S = batch, hidden, seq_len
    x = x_ref[...]                                   # (S*B, I), time-major rows

    # ---- layer 0: hoisted input projections (off the recurrent chain),
    # already in the fused gate layout; bias folded into the fwd projection ----
    p0f = jnp.dot(x, a0f_ref[...], preferred_element_type=jnp.float32) + b0_ref[...]
    p0r = jnp.dot(x, a0r_ref[...], preferred_element_type=jnp.float32)

    h0_steps, h0_last = _run_fused_layer(p0f, p0r, whh0_ref[...],
                                         batch=B, hidden=H, seq_len=S)

    # ---- per-time layer-0 features for layer 1 (all off the serial chain) ----
    # fwd output at time t = step t, first half; rev output at time t = step
    # S-1-t, second half.
    y0f = jnp.concatenate([h0_steps[t][:, :H] for t in range(S)], axis=0)
    y0r = jnp.concatenate([h0_steps[S - 1 - t][:, H:] for t in range(S)], axis=0)

    # ---- layer 1: input = [fwd feats | rev feats]; fused W_ih split by row
    # block so no in-kernel lane concat of the layer-0 outputs is needed ----
    a1f = a1f_ref[...]                               # (2H, 8H)
    a1r = a1r_ref[...]
    p1f = (jnp.dot(y0f, a1f[:H, :], preferred_element_type=jnp.float32)
           + jnp.dot(y0r, a1f[H:, :], preferred_element_type=jnp.float32)
           + b1_ref[...])
    p1r = (jnp.dot(y0f, a1r[:H, :], preferred_element_type=jnp.float32)
           + jnp.dot(y0r, a1r[H:, :], preferred_element_type=jnp.float32))

    _, h1_last = _run_fused_layer(p1f, p1r, whh1_ref[...],
                                  batch=B, hidden=H, seq_len=S, collect=False)

    # ---- fused epilogue: h_n.view(-1, L*D*H) -> ReLU -> fc_small ----
    # PyTorch h_n row order ld = layer*D + dir; final fwd/rev states are the
    # two lane halves of each layer's final fused state.
    pieces = [h0_last[:, :H], h0_last[:, H:], h1_last[:, :H], h1_last[:, H:]]
    ld_count = len(pieces)                           # num_layers * num_dirs
    n_rows = B                                       # == (ld*B*H)//(ld*H)
    wfc = wfc_ref[...]                               # (L*D*H, C)
    acc = jnp.zeros((n_rows, num_classes), jnp.float32) + bfc_ref[...]
    # Viewed row r, column block q pair with h_n flat row m = r*L*D + q, i.e.
    # (ld, b) = divmod(m, B).  All indices are static Python ints -> L*D tiny
    # MXU matmuls, no reshapes, no dynamic gathers.
    for q in range(ld_count):
        rows = []
        for r in range(n_rows):
            ld, b = divmod(r * ld_count + q, B)
            rows.append(pieces[ld][b:b + 1, :])
        blk = rows[0] if n_rows == 1 else jnp.concatenate(rows, axis=0)
        acc = acc + jnp.dot(jnp.maximum(blk, 0.0), wfc[q * H:(q + 1) * H, :],
                            preferred_element_type=jnp.float32)
    out_ref[...] = acc                               # single HBM writeback


# ------------------------------ wrapper --------------------------------------
def lstm_bibatch_forward(x, params):
    """Full LSTM_bibatch.forward as ONE fused Pallas call (inference)."""
    assert BIDIRECTIONAL and NUM_LAYERS == 2, "kernel specialized for 2-layer bi-LSTM"
    B, S, I = x.shape
    H = HIDDEN_SIZE
    # time-major flattened rows (t*B + b): timestep t is a contiguous row block
    x2d = jnp.transpose(x, (1, 0, 2)).reshape(S * B, I).astype(jnp.float32)

    fused_args = []
    for layer in range(NUM_LAYERS):
        w_ih_f, w_hh_f, b_ih_f, b_hh_f = params[f"lstm_l{layer}_d0"]
        w_ih_r, w_hh_r, b_ih_r, b_hh_r = params[f"lstm_l{layer}_d1"]
        a_f, a_r = _fuse_ih(w_ih_f, w_ih_r, H)
        b_full = _fuse_bias(b_ih_f + b_hh_f, b_ih_r + b_hh_r, H)
        whh = _fuse_hh(w_hh_f, w_hh_r, H)
        fused_args += [a_f, a_r, b_full, whh]

    w_fc, b_fc = params["fc"]
    args = ([x2d] + fused_args +
            [jnp.asarray(w_fc.T, jnp.float32),                 # (L*D*H, C)
             b_fc.reshape(1, NUM_CLASSES).astype(jnp.float32)])

    kernel = functools.partial(_lstm_bibatch_kernel, batch=B, hidden=H,
                               seq_len=S, num_classes=NUM_CLASSES)

    vmem = pl.BlockSpec(memory_space=pltpu.MemorySpace.VMEM)
    # No grid, no scratch: weights + activations are a few hundred KB and stay
    # VMEM-resident; single kernel launch, single output DMA.
    return pl.pallas_call(
        kernel,
        out_shape=jax.ShapeDtypeStruct((B, NUM_CLASSES), jnp.float32),
        in_specs=[vmem] * len(args),
        out_specs=vmem,
    )(*args)


# ------------------------------ params / reference ---------------------------
def init_params(key):
    params = {}
    k = 1.0 / float(HIDDEN_SIZE) ** 0.5
    keys = jax.random.split(key, NUM_LAYERS * NUM_DIR * 4 + 2)
    ki = 0
    for layer in range(NUM_LAYERS):
        in_sz = INPUT_SIZE if layer == 0 else NUM_DIR * HIDDEN_SIZE
        for d in range(NUM_DIR):
            w_ih = jax.random.uniform(keys[ki], (4 * HIDDEN_SIZE, in_sz),
                                      jnp.float32, -k, k); ki += 1
            w_hh = jax.random.uniform(keys[ki], (4 * HIDDEN_SIZE, HIDDEN_SIZE),
                                      jnp.float32, -k, k); ki += 1
            b_ih = jax.random.uniform(keys[ki], (4 * HIDDEN_SIZE,),
                                      jnp.float32, -k, k); ki += 1
            b_hh = jax.random.uniform(keys[ki], (4 * HIDDEN_SIZE,),
                                      jnp.float32, -k, k); ki += 1
            params[f"lstm_l{layer}_d{d}"] = (w_ih, w_hh, b_ih, b_hh)
    fc_in = NUM_LAYERS * NUM_DIR * HIDDEN_SIZE
    kf = 1.0 / float(fc_in) ** 0.5
    w_fc = jax.random.uniform(keys[ki], (NUM_CLASSES, fc_in),
                              jnp.float32, -kf, kf); ki += 1
    b_fc = jax.random.uniform(keys[ki], (NUM_CLASSES,), jnp.float32, -kf, kf)
    params["fc"] = (w_fc, b_fc)
    return params


def reference_forward(x, params):
    """Pure-JAX reference with identical semantics (for sanity check)."""
    B = x.shape[0]
    layer_in = jnp.transpose(x, (1, 0, 2)).astype(jnp.float32)
    h_finals = []
    for layer in range(NUM_LAYERS):
        dir_outs = []
        for d in range(NUM_DIR):
            w_ih, w_hh, b_ih, b_hh = params[f"lstm_l{layer}_d{d}"]
            b = (b_ih + b_hh)[None, :]
            seq = layer_in if d == 0 else layer_in[::-1]

            def step(carry, x_t, w_ih=w_ih, w_hh=w_hh, b=b):
                h, c = carry
                gates = x_t @ w_ih.T + h @ w_hh.T + b
                i, f, g, o = jnp.split(gates, 4, axis=-1)
                c = jax.nn.sigmoid(f) * c + jax.nn.sigmoid(i) * jnp.tanh(g)
                h = jax.nn.sigmoid(o) * jnp.tanh(c)
                return (h, c), h

            init = (jnp.zeros((B, HIDDEN_SIZE), jnp.float32),
                    jnp.zeros((B, HIDDEN_SIZE), jnp.float32))
            (h_last, _), outs = jax.lax.scan(step, init, seq)
            if d == 1:
                outs = outs[::-1]
            dir_outs.append(outs)
            h_finals.append(h_last)
        layer_in = jnp.concatenate(dir_outs, axis=-1)
    h_n = jnp.stack(h_finals, axis=0)
    out = h_n.reshape(-1, NUM_LAYERS * NUM_DIR * HIDDEN_SIZE)
    out = jnp.maximum(out, 0.0)
    w_fc, b_fc = params["fc"]
    return out @ w_fc.T + b_fc


# ---------------------------------- main -------------------------------------
if __name__ == "__main__":
    key = jax.random.PRNGKey(0)
    pkey, xkey = jax.random.split(key)
    params = init_params(pkey)
    x = jax.random.normal(xkey, (BATCH, SEQ_LEN, INPUT_SIZE), dtype=jnp.float32)

    fwd = jax.jit(lstm_bibatch_forward)
    logits = jax.block_until_ready(fwd(x, params))
    assert logits.shape == (BATCH, NUM_CLASSES)

    ref = reference_forward(x, params)
    assert jnp.allclose(logits, ref, rtol=2e-2, atol=2e-2), "mismatch vs reference"

    print("KERNEL_OK")
</pallas_src>

<mosaic_0001>
module attributes {stable_mosaic.version = 11 : i64} {
  func.func @_lstm_bibatch_kernel(%arg0: memref<16x8xf32, #tpu.memory_space<vmem>>, %arg1: memref<8x256xf32, #tpu.memory_space<vmem>>, %arg2: memref<8x256xf32, #tpu.memory_space<vmem>>, %arg3: memref<1x256xf32, #tpu.memory_space<vmem>>, %arg4: memref<64x256xf32, #tpu.memory_space<vmem>>, %arg5: memref<64x256xf32, #tpu.memory_space<vmem>>, %arg6: memref<64x256xf32, #tpu.memory_space<vmem>>, %arg7: memref<1x256xf32, #tpu.memory_space<vmem>>, %arg8: memref<64x256xf32, #tpu.memory_space<vmem>>, %arg9: memref<128x4xf32, #tpu.memory_space<vmem>>, %arg10: memref<1x4xf32, #tpu.memory_space<vmem>>, %arg11: memref<2x4xf32, #tpu.memory_space<vmem>>) attributes {dimension_semantics = [], scalar_prefetch = 0 : i64, scratch_operands = 0 : i64, tpu.core_type = #tpu.core_type<tc>} {
    %c0 = arith.constant 0 : index
    %c0_0 = arith.constant 0 : index
    %0 = vector.load %arg0[%c0, %c0_0] : memref<16x8xf32, #tpu.memory_space<vmem>>, vector<16x8xf32>
    %c0_1 = arith.constant 0 : index
    %c0_2 = arith.constant 0 : index
    %1 = vector.load %arg1[%c0_1, %c0_2] : memref<8x256xf32, #tpu.memory_space<vmem>>, vector<8x256xf32>
    %cst = arith.constant dense<0.000000e+00> : vector<16x256xf32>
    %2 = tpu.matmul %0, %1, %cst {dimension_numbers = #tpu.dot_dimension_numbers<[1], [0], [0], [1], [0, 0, 1, 1], [], []>} : vector<16x8xf32>, vector<8x256xf32>, vector<16x256xf32> -> vector<16x256xf32>
    %c0_3 = arith.constant 0 : index
    %c0_4 = arith.constant 0 : index
    %3 = vector.load %arg3[%c0_3, %c0_4] : memref<1x256xf32, #tpu.memory_space<vmem>>, vector<1x256xf32>
    %4 = vector.broadcast %3 : vector<1x256xf32> to vector<16x256xf32>
    %5 = arith.addf %2, %4 : vector<16x256xf32>
    %c0_5 = arith.constant 0 : index
    %c0_6 = arith.constant 0 : index
    %6 = vector.load %arg2[%c0_5, %c0_6] : memref<8x256xf32, #tpu.memory_space<vmem>>, vector<8x256xf32>
    %cst_7 = arith.constant dense<0.000000e+00> : vector<16x256xf32>
    %7 = tpu.matmul %0, %6, %cst_7 {dimension_numbers = #tpu.dot_dimension_numbers<[1], [0], [0], [1], [0, 0, 1, 1], [], []>} : vector<16x8xf32>, vector<8x256xf32>, vector<16x256xf32> -> vector<16x256xf32>
    %c0_8 = arith.constant 0 : index
    %c0_9 = arith.constant 0 : index
    %8 = vector.load %arg4[%c0_8, %c0_9] : memref<64x256xf32, #tpu.memory_space<vmem>>, vector<64x256xf32>
    %cst_10 = arith.constant 0.000000e+00 : f32
    %9 = vector.broadcast %cst_10 : f32 to vector<2x64xf32>
    %cst_11 = arith.constant 0.000000e+00 : f32
    %10 = vector.broadcast %cst_11 : f32 to vector<2x64xf32>
    %11 = vector.extract_strided_slice %5 {offsets = [0, 0], sizes = [2, 256], strides = [1, 1]} : vector<16x256xf32> to vector<2x256xf32>
    %12 = vector.extract_strided_slice %7 {offsets = [14, 0], sizes = [2, 256], strides = [1, 1]} : vector<16x256xf32> to vector<2x256xf32>
    %13 = arith.addf %11, %12 : vector<2x256xf32>
    %cst_12 = arith.constant dense<0.000000e+00> : vector<2x256xf32>
    %14 = tpu.matmul %9, %8, %cst_12 {dimension_numbers = #tpu.dot_dimension_numbers<[1], [0], [0], [1], [0, 0, 1, 1], [], []>} : vector<2x64xf32>, vector<64x256xf32>, vector<2x256xf32> -> vector<2x256xf32>
    %15 = arith.addf %13, %14 : vector<2x256xf32>
    %16 = arith.negf %15 : vector<2x256xf32>
    %17 = math.exp %16 : vector<2x256xf32>
    %cst_13 = arith.constant 1.000000e+00 : f32
    %18 = vector.broadcast %cst_13 : f32 to vector<2x256xf32>
    %19 = arith.addf %18, %17 : vector<2x256xf32>
    %20 = arith.divf %18, %19 : vector<2x256xf32>
    %21 = math.tanh %15 : vector<2x256xf32>
    %22 = vector.extract_strided_slice %20 {offsets = [0, 0], sizes = [2, 64], strides = [1, 1]} : vector<2x256xf32> to vector<2x64xf32>
    %23 = vector.extract_strided_slice %20 {offsets = [0, 64], sizes = [2, 64], strides = [1, 1]} : vector<2x256xf32> to vector<2x64xf32>
    %24 = vector.extract_strided_slice %21 {offsets = [0, 128], sizes = [2, 64], strides = [1, 1]} : vector<2x256xf32> to vector<2x64xf32>
    %25 = vector.extract_strided_slice %20 {offsets = [0, 192], sizes = [2, 64], strides = [1, 1]} : vector<2x256xf32> to vector<2x64xf32>
    %26 = arith.mulf %23, %10 : vector<2x64xf32>
    %27 = arith.mulf %22, %24 : vector<2x64xf32>
    %28 = arith.addf %26, %27 : vector<2x64xf32>
    %29 = math.tanh %28 : vector<2x64xf32>
    %30 = arith.mulf %25, %29 : vector<2x64xf32>
    %31 = vector.extract_strided_slice %5 {offsets = [2, 0], sizes = [2, 256], strides = [1, 1]} : vector<16x256xf32> to vector<2x256xf32>
    %32 = vector.extract_strided_slice %7 {offsets = [12, 0], sizes = [2, 256], strides = [1, 1]} : vector<16x256xf32> to vector<2x256xf32>
    %33 = arith.addf %31, %32 : vector<2x256xf32>
    %cst_14 = arith.constant dense<0.000000e+00> : vector<2x256xf32>
    %34 = tpu.matmul %30, %8, %cst_14 {dimension_numbers = #tpu.dot_dimension_numbers<[1], [0], [0], [1], [0, 0, 1, 1], [], []>} : vector<2x64xf32>, vector<64x256xf32>, vector<2x256xf32> -> vector<2x256xf32>
    %35 = arith.addf %33, %34 : vector<2x256xf32>
    %36 = arith.negf %35 : vector<2x256xf32>
    %37 = math.exp %36 : vector<2x256xf32>
    %cst_15 = arith.constant 1.000000e+00 : f32
    %38 = vector.broadcast %cst_15 : f32 to vector<2x256xf32>
    %39 = arith.addf %38, %37 : vector<2x256xf32>
    %40 = arith.divf %38, %39 : vector<2x256xf32>
    %41 = math.tanh %35 : vector<2x256xf32>
    %42 = vector.extract_strided_slice %40 {offsets = [0, 0], sizes = [2, 64], strides = [1, 1]} : vector<2x256xf32> to vector<2x64xf32>
    %43 = vector.extract_strided_slice %40 {offsets = [0, 64], sizes = [2, 64], strides = [1, 1]} : vector<2x256xf32> to vector<2x64xf32>
    %44 = vector.extract_strided_slice %41 {offsets = [0, 128], sizes = [2, 64], strides = [1, 1]} : vector<2x256xf32> to vector<2x64xf32>
    %45 = vector.extract_strided_slice %40 {offsets = [0, 192], sizes = [2, 64], strides = [1, 1]} : vector<2x256xf32> to vector<2x64xf32>
    %46 = arith.mulf %43, %28 : vector<2x64xf32>
    %47 = arith.mulf %42, %44 : vector<2x64xf32>
    %48 = arith.addf %46, %47 : vector<2x64xf32>
    %49 = math.tanh %48 : vector<2x64xf32>
    %50 = arith.mulf %45, %49 : vector<2x64xf32>
    %51 = vector.extract_strided_slice %5 {offsets = [4, 0], sizes = [2, 256], strides = [1, 1]} : vector<16x256xf32> to vector<2x256xf32>
    %52 = vector.extract_strided_slice %7 {offsets = [10, 0], sizes = [2, 256], strides = [1, 1]} : vector<16x256xf32> to vector<2x256xf32>
    %53 = arith.addf %51, %52 : vector<2x256xf32>
    %cst_16 = arith.constant dense<0.000000e+00> : vector<2x256xf32>
    %54 = tpu.matmul %50, %8, %cst_16 {dimension_numbers = #tpu.dot_dimension_numbers<[1], [0], [0], [1], [0, 0, 1, 1], [], []>} : vector<2x64xf32>, vector<64x256xf32>, vector<2x256xf32> -> vector<2x256xf32>
    %55 = arith.addf %53, %54 : vector<2x256xf32>
    %56 = arith.negf %55 : vector<2x256xf32>
    %57 = math.exp %56 : vector<2x256xf32>
    %cst_17 = arith.constant 1.000000e+00 : f32
    %58 = vector.broadcast %cst_17 : f32 to vector<2x256xf32>
    %59 = arith.addf %58, %57 : vector<2x256xf32>
    %60 = arith.divf %58, %59 : vector<2x256xf32>
    %61 = math.tanh %55 : vector<2x256xf32>
    %62 = vector.extract_strided_slice %60 {offsets = [0, 0], sizes = [2, 64], strides = [1, 1]} : vector<2x256xf32> to vector<2x64xf32>
    %63 = vector.extract_strided_slice %60 {offsets = [0, 64], sizes = [2, 64], strides = [1, 1]} : vector<2x256xf32> to vector<2x64xf32>
    %64 = vector.extract_strided_slice %61 {offsets = [0, 128], sizes = [2, 64], strides = [1, 1]} : vector<2x256xf32> to vector<2x64xf32>
    %65 = vector.extract_strided_slice %60 {offsets = [0, 192], sizes = [2, 64], strides = [1, 1]} : vector<2x256xf32> to vector<2x64xf32>
    %66 = arith.mulf %63, %48 : vector<2x64xf32>
    %67 = arith.mulf %62, %64 : vector<2x64xf32>
    %68 = arith.addf %66, %67 : vector<2x64xf32>
    %69 = math.tanh %68 : vector<2x64xf32>
    %70 = arith.mulf %65, %69 : vector<2x64xf32>
    %71 = vector.extract_strided_slice %5 {offsets = [6, 0], sizes = [2, 256], strides = [1, 1]} : vector<16x256xf32> to vector<2x256xf32>
    %72 = vector.extract_strided_slice %7 {offsets = [8, 0], sizes = [2, 256], strides = [1, 1]} : vector<16x256xf32> to vector<2x256xf32>
    %73 = arith.addf %71, %72 : vector<2x256xf32>
    %cst_18 = arith.constant dense<0.000000e+00> : vector<2x256xf32>
    %74 = tpu.matmul %70, %8, %cst_18 {dimension_numbers = #tpu.dot_dimension_numbers<[1], [0], [0], [1], [0, 0, 1, 1], [], []>} : vector<2x64xf32>, vector<64x256xf32>, vector<2x256xf32> -> vector<2x256xf32>
    %75 = arith.addf %73, %74 : vector<2x256xf32>
    %76 = arith.negf %75 : vector<2x256xf32>
    %77 = math.exp %76 : vector<2x256xf32>
    %cst_19 = arith.constant 1.000000e+00 : f32
    %78 = vector.broadcast %cst_19 : f32 to vector<2x256xf32>
    %79 = arith.addf %78, %77 : vector<2x256xf32>
    %80 = arith.divf %78, %79 : vector<2x256xf32>
    %81 = math.tanh %75 : vector<2x256xf32>
    %82 = vector.extract_strided_slice %80 {offsets = [0, 0], sizes = [2, 64], strides = [1, 1]} : vector<2x256xf32> to vector<2x64xf32>
    %83 = vector.extract_strided_slice %80 {offsets = [0, 64], sizes = [2, 64], strides = [1, 1]} : vector<2x256xf32> to vector<2x64xf32>
    %84 = vector.extract_strided_slice %81 {offsets = [0, 128], sizes = [2, 64], strides = [1, 1]} : vector<2x256xf32> to vector<2x64xf32>
    %85 = vector.extract_strided_slice %80 {offsets = [0, 192], sizes = [2, 64], strides = [1, 1]} : vector<2x256xf32> to vector<2x64xf32>
    %86 = arith.mulf %83, %68 : vector<2x64xf32>
    %87 = arith.mulf %82, %84 : vector<2x64xf32>
    %88 = arith.addf %86, %87 : vector<2x64xf32>
    %89 = math.tanh %88 : vector<2x64xf32>
    %90 = arith.mulf %85, %89 : vector<2x64xf32>
    %91 = vector.extract_strided_slice %5 {offsets = [8, 0], sizes = [2, 256], strides = [1, 1]} : vector<16x256xf32> to vector<2x256xf32>
    %92 = vector.extract_strided_slice %7 {offsets = [6, 0], sizes = [2, 256], strides = [1, 1]} : vector<16x256xf32> to vector<2x256xf32>
    %93 = arith.addf %91, %92 : vector<2x256xf32>
    %cst_20 = arith.constant dense<0.000000e+00> : vector<2x256xf32>
    %94 = tpu.matmul %90, %8, %cst_20 {dimension_numbers = #tpu.dot_dimension_numbers<[1], [0], [0], [1], [0, 0, 1, 1], [], []>} : vector<2x64xf32>, vector<64x256xf32>, vector<2x256xf32> -> vector<2x256xf32>
    %95 = arith.addf %93, %94 : vector<2x256xf32>
    %96 = arith.negf %95 : vector<2x256xf32>
    %97 = math.exp %96 : vector<2x256xf32>
    %cst_21 = arith.constant 1.000000e+00 : f32
    %98 = vector.broadcast %cst_21 : f32 to vector<2x256xf32>
    %99 = arith.addf %98, %97 : vector<2x256xf32>
    %100 = arith.divf %98, %99 : vector<2x256xf32>
    %101 = math.tanh %95 : vector<2x256xf32>
    %102 = vector.extract_strided_slice %100 {offsets = [0, 0], sizes = [2, 64], strides = [1, 1]} : vector<2x256xf32> to vector<2x64xf32>
    %103 = vector.extract_strided_slice %100 {offsets = [0, 64], sizes = [2, 64], strides = [1, 1]} : vector<2x256xf32> to vector<2x64xf32>
    %104 = vector.extract_strided_slice %101 {offsets = [0, 128], sizes = [2, 64], strides = [1, 1]} : vector<2x256xf32> to vector<2x64xf32>
    %105 = vector.extract_strided_slice %100 {offsets = [0, 192], sizes = [2, 64], strides = [1, 1]} : vector<2x256xf32> to vector<2x64xf32>
    %106 = arith.mulf %103, %88 : vector<2x64xf32>
    %107 = arith.mulf %102, %104 : vector<2x64xf32>
    %108 = arith.addf %106, %107 : vector<2x64xf32>
    %109 = math.tanh %108 : vector<2x64xf32>
    %110 = arith.mulf %105, %109 : vector<2x64xf32>
    %111 = vector.extract_strided_slice %5 {offsets = [10, 0], sizes = [2, 256], strides = [1, 1]} : vector<16x256xf32> to vector<2x256xf32>
    %112 = vector.extract_strided_slice %7 {offsets = [4, 0], sizes = [2, 256], strides = [1, 1]} : vector<16x256xf32> to vector<2x256xf32>
    %113 = arith.addf %111, %112 : vector<2x256xf32>
    %cst_22 = arith.constant dense<0.000000e+00> : vector<2x256xf32>
    %114 = tpu.matmul %110, %8, %cst_22 {dimension_numbers = #tpu.dot_dimension_numbers<[1], [0], [0], [1], [0, 0, 1, 1], [], []>} : vector<2x64xf32>, vector<64x256xf32>, vector<2x256xf32> -> vector<2x256xf32>
    %115 = arith.addf %113, %114 : vector<2x256xf32>
    %116 = arith.negf %115 : vector<2x256xf32>
    %117 = math.exp %116 : vector<2x256xf32>
    %cst_23 = arith.constant 1.000000e+00 : f32
    %118 = vector.broadcast %cst_23 : f32 to vector<2x256xf32>
    %119 = arith.addf %118, %117 : vector<2x256xf32>
    %120 = arith.divf %118, %119 : vector<2x256xf32>
    %121 = math.tanh %115 : vector<2x256xf32>
    %122 = vector.extract_strided_slice %120 {offsets = [0, 0], sizes = [2, 64], strides = [1, 1]} : vector<2x256xf32> to vector<2x64xf32>
    %123 = vector.extract_strided_slice %120 {offsets = [0, 64], sizes = [2, 64], strides = [1, 1]} : vector<2x256xf32> to vector<2x64xf32>
    %124 = vector.extract_strided_slice %121 {offsets = [0, 128], sizes = [2, 64], strides = [1, 1]} : vector<2x256xf32> to vector<2x64xf32>
    %125 = vector.extract_strided_slice %120 {offsets = [0, 192], sizes = [2, 64], strides = [1, 1]} : vector<2x256xf32> to vector<2x64xf32>
    %126 = arith.mulf %123, %108 : vector<2x64xf32>
    %127 = arith.mulf %122, %124 : vector<2x64xf32>
    %128 = arith.addf %126, %127 : vector<2x64xf32>
    %129 = math.tanh %128 : vector<2x64xf32>
    %130 = arith.mulf %125, %129 : vector<2x64xf32>
    %131 = vector.extract_strided_slice %5 {offsets = [12, 0], sizes = [2, 256], strides = [1, 1]} : vector<16x256xf32> to vector<2x256xf32>
    %132 = vector.extract_strided_slice %7 {offsets = [2, 0], sizes = [2, 256], strides = [1, 1]} : vector<16x256xf32> to vector<2x256xf32>
    %133 = arith.addf %131, %132 : vector<2x256xf32>
    %cst_24 = arith.constant dense<0.000000e+00> : vector<2x256xf32>
    %134 = tpu.matmul %130, %8, %cst_24 {dimension_numbers = #tpu.dot_dimension_numbers<[1], [0], [0], [1], [0, 0, 1, 1], [], []>} : vector<2x64xf32>, vector<64x256xf32>, vector<2x256xf32> -> vector<2x256xf32>
    %135 = arith.addf %133, %134 : vector<2x256xf32>
    %136 = arith.negf %135 : vector<2x256xf32>
    %137 = math.exp %136 : vector<2x256xf32>
    %cst_25 = arith.constant 1.000000e+00 : f32
    %138 = vector.broadcast %cst_25 : f32 to vector<2x256xf32>
    %139 = arith.addf %138, %137 : vector<2x256xf32>
    %140 = arith.divf %138, %139 : vector<2x256xf32>
    %141 = math.tanh %135 : vector<2x256xf32>
    %142 = vector.extract_strided_slice %140 {offsets = [0, 0], sizes = [2, 64], strides = [1, 1]} : vector<2x256xf32> to vector<2x64xf32>
    %143 = vector.extract_strided_slice %140 {offsets = [0, 64], sizes = [2, 64], strides = [1, 1]} : vector<2x256xf32> to vector<2x64xf32>
    %144 = vector.extract_strided_slice %141 {offsets = [0, 128], sizes = [2, 64], strides = [1, 1]} : vector<2x256xf32> to vector<2x64xf32>
    %145 = vector.extract_strided_slice %140 {offsets = [0, 192], sizes = [2, 64], strides = [1, 1]} : vector<2x256xf32> to vector<2x64xf32>
    %146 = arith.mulf %143, %128 : vector<2x64xf32>
    %147 = arith.mulf %142, %144 : vector<2x64xf32>
    %148 = arith.addf %146, %147 : vector<2x64xf32>
    %149 = math.tanh %148 : vector<2x64xf32>
    %150 = arith.mulf %145, %149 : vector<2x64xf32>
    %151 = vector.extract_strided_slice %5 {offsets = [14, 0], sizes = [2, 256], strides = [1, 1]} : vector<16x256xf32> to vector<2x256xf32>
    %152 = vector.extract_strided_slice %7 {offsets = [0, 0], sizes = [2, 256], strides = [1, 1]} : vector<16x256xf32> to vector<2x256xf32>
    %153 = arith.addf %151, %152 : vector<2x256xf32>
    %cst_26 = arith.constant dense<0.000000e+00> : vector<2x256xf32>
    %154 = tpu.matmul %150, %8, %cst_26 {dimension_numbers = #tpu.dot_dimension_numbers<[1], [0], [0], [1], [0, 0, 1, 1], [], []>} : vector<2x64xf32>, vector<64x256xf32>, vector<2x256xf32> -> vector<2x256xf32>
    %155 = arith.addf %153, %154 : vector<2x256xf32>
    %156 = arith.negf %155 : vector<2x256xf32>
    %157 = math.exp %156 : vector<2x256xf32>
    %cst_27 = arith.constant 1.000000e+00 : f32
    %158 = vector.broadcast %cst_27 : f32 to vector<2x256xf32>
    %159 = arith.addf %158, %157 : vector<2x256xf32>
    %160 = arith.divf %158, %159 : vector<2x256xf32>
    %161 = math.tanh %155 : vector<2x256xf32>
    %162 = vector.extract_strided_slice %160 {offsets = [0, 0], sizes = [2, 64], strides = [1, 1]} : vector<2x256xf32> to vector<2x64xf32>
    %163 = vector.extract_strided_slice %160 {offsets = [0, 64], sizes = [2, 64], strides = [1, 1]} : vector<2x256xf32> to vector<2x64xf32>
    %164 = vector.extract_strided_slice %161 {offsets = [0, 128], sizes = [2, 64], strides = [1, 1]} : vector<2x256xf32> to vector<2x64xf32>
    %165 = vector.extract_strided_slice %160 {offsets = [0, 192], sizes = [2, 64], strides = [1, 1]} : vector<2x256xf32> to vector<2x64xf32>
    %166 = arith.mulf %163, %148 : vector<2x64xf32>
    %167 = arith.mulf %162, %164 : vector<2x64xf32>
    %168 = arith.addf %166, %167 : vector<2x64xf32>
    %169 = math.tanh %168 : vector<2x64xf32>
    %170 = arith.mulf %165, %169 : vector<2x64xf32>
    %171 = vector.extract_strided_slice %30 {offsets = [0, 0], sizes = [2, 32], strides = [1, 1]} : vector<2x64xf32> to vector<2x32xf32>
    %172 = vector.extract_strided_slice %50 {offsets = [0, 0], sizes = [2, 32], strides = [1, 1]} : vector<2x64xf32> to vector<2x32xf32>
    %173 = vector.extract_strided_slice %70 {offsets = [0, 0], sizes = [2, 32], strides = [1, 1]} : vector<2x64xf32> to vector<2x32xf32>
    %174 = vector.extract_strided_slice %90 {offsets = [0, 0], sizes = [2, 32], strides = [1, 1]} : vector<2x64xf32> to vector<2x32xf32>
    %175 = vector.extract_strided_slice %110 {offsets = [0, 0], sizes = [2, 32], strides = [1, 1]} : vector<2x64xf32> to vector<2x32xf32>
    %176 = vector.extract_strided_slice %130 {offsets = [0, 0], sizes = [2, 32], strides = [1, 1]} : vector<2x64xf32> to vector<2x32xf32>
    %177 = vector.extract_strided_slice %150 {offsets = [0, 0], sizes = [2, 32], strides = [1, 1]} : vector<2x64xf32> to vector<2x32xf32>
    %178 = vector.extract_strided_slice %170 {offsets = [0, 0], sizes = [2, 32], strides = [1, 1]} : vector<2x64xf32> to vector<2x32xf32>
    %179 = tpu.concatenate %171, %172, %173, %174, %175, %176, %177, %178 in 0 : vector<2x32xf32>, vector<2x32xf32>, vector<2x32xf32>, vector<2x32xf32>, vector<2x32xf32>, vector<2x32xf32>, vector<2x32xf32>, vector<2x32xf32> -> vector<16x32xf32>
    %180 = vector.extract_strided_slice %170 {offsets = [0, 32], sizes = [2, 32], strides = [1, 1]} : vector<2x64xf32> to vector<2x32xf32>
    %181 = vector.extract_strided_slice %150 {offsets = [0, 32], sizes = [2, 32], strides = [1, 1]} : vector<2x64xf32> to vector<2x32xf32>
    %182 = vector.extract_strided_slice %130 {offsets = [0, 32], sizes = [2, 32], strides = [1, 1]} : vector<2x64xf32> to vector<2x32xf32>
    %183 = vector.extract_strided_slice %110 {offsets = [0, 32], sizes = [2, 32], strides = [1, 1]} : vector<2x64xf32> to vector<2x32xf32>
    %184 = vector.extract_strided_slice %90 {offsets = [0, 32], sizes = [2, 32], strides = [1, 1]} : vector<2x64xf32> to vector<2x32xf32>
    %185 = vector.extract_strided_slice %70 {offsets = [0, 32], sizes = [2, 32], strides = [1, 1]} : vector<2x64xf32> to vector<2x32xf32>
    %186 = vector.extract_strided_slice %50 {offsets = [0, 32], sizes = [2, 32], strides = [1, 1]} : vector<2x64xf32> to vector<2x32xf32>
    %187 = vector.extract_strided_slice %30 {offsets = [0, 32], sizes = [2, 32], strides = [1, 1]} : vector<2x64xf32> to vector<2x32xf32>
    %188 = tpu.concatenate %180, %181, %182, %183, %184, %185, %186, %187 in 0 : vector<2x32xf32>, vector<2x32xf32>, vector<2x32xf32>, vector<2x32xf32>, vector<2x32xf32>, vector<2x32xf32>, vector<2x32xf32>, vector<2x32xf32> -> vector<16x32xf32>
    %c0_28 = arith.constant 0 : index
    %c0_29 = arith.constant 0 : index
    %189 = vector.load %arg5[%c0_28, %c0_29] : memref<64x256xf32, #tpu.memory_space<vmem>>, vector<64x256xf32>
    %c0_30 = arith.constant 0 : index
    %c0_31 = arith.constant 0 : index
    %190 = vector.load %arg6[%c0_30, %c0_31] : memref<64x256xf32, #tpu.memory_space<vmem>>, vector<64x256xf32>
    %191 = vector.extract_strided_slice %189 {offsets = [0, 0], sizes = [32, 256], strides = [1, 1]} : vector<64x256xf32> to vector<32x256xf32>
    %cst_32 = arith.constant dense<0.000000e+00> : vector<16x256xf32>
    %192 = tpu.matmul %179, %191, %cst_32 {dimension_numbers = #tpu.dot_dimension_numbers<[1], [0], [0], [1], [0, 0, 1, 1], [], []>} : vector<16x32xf32>, vector<32x256xf32>, vector<16x256xf32> -> vector<16x256xf32>
    %193 = vector.extract_strided_slice %189 {offsets = [32, 0], sizes = [32, 256], strides = [1, 1]} : vector<64x256xf32> to vector<32x256xf32>
    %cst_33 = arith.constant dense<0.000000e+00> : vector<16x256xf32>
    %194 = tpu.matmul %188, %193, %cst_33 {dimension_numbers = #tpu.dot_dimension_numbers<[1], [0], [0], [1], [0, 0, 1, 1], [], []>} : vector<16x32xf32>, vector<32x256xf32>, vector<16x256xf32> -> vector<16x256xf32>
    %195 = arith.addf %192, %194 : vector<16x256xf32>
    %c0_34 = arith.constant 0 : index
    %c0_35 = arith.constant 0 : index
    %196 = vector.load %arg7[%c0_34, %c0_35] : memref<1x256xf32, #tpu.memory_space<vmem>>, vector<1x256xf32>
    %197 = vector.broadcast %196 : vector<1x256xf32> to vector<16x256xf32>
    %198 = arith.addf %195, %197 : vector<16x256xf32>
    %199 = vector.extract_strided_slice %190 {offsets = [0, 0], sizes = [32, 256], strides = [1, 1]} : vector<64x256xf32> to vector<32x256xf32>
    %cst_36 = arith.constant dense<0.000000e+00> : vector<16x256xf32>
    %200 = tpu.matmul %179, %199, %cst_36 {dimension_numbers = #tpu.dot_dimension_numbers<[1], [0], [0], [1], [0, 0, 1, 1], [], []>} : vector<16x32xf32>, vector<32x256xf32>, vector<16x256xf32> -> vector<16x256xf32>
    %201 = vector.extract_strided_slice %190 {offsets = [32, 0], sizes = [32, 256], strides = [1, 1]} : vector<64x256xf32> to vector<32x256xf32>
    %cst_37 = arith.constant dense<0.000000e+00> : vector<16x256xf32>
    %202 = tpu.matmul %188, %201, %cst_37 {dimension_numbers = #tpu.dot_dimension_numbers<[1], [0], [0], [1], [0, 0, 1, 1], [], []>} : vector<16x32xf32>, vector<32x256xf32>, vector<16x256xf32> -> vector<16x256xf32>
    %203 = arith.addf %200, %202 : vector<16x256xf32>
    %c0_38 = arith.constant 0 : index
    %c0_39 = arith.constant 0 : index
    %204 = vector.load %arg8[%c0_38, %c0_39] : memref<64x256xf32, #tpu.memory_space<vmem>>, vector<64x256xf32>
    %cst_40 = arith.constant 0.000000e+00 : f32
    %205 = vector.broadcast %cst_40 : f32 to vector<2x64xf32>
    %cst_41 = arith.constant 0.000000e+00 : f32
    %206 = vector.broadcast %cst_41 : f32 to vector<2x64xf32>
    %207 = vector.extract_strided_slice %198 {offsets = [0, 0], sizes = [2, 256], strides = [1, 1]} : vector<16x256xf32> to vector<2x256xf32>
    %208 = vector.extract_strided_slice %203 {offsets = [14, 0], sizes = [2, 256], strides = [1, 1]} : vector<16x256xf32> to vector<2x256xf32>
    %209 = arith.addf %207, %208 : vector<2x256xf32>
    %cst_42 = arith.constant dense<0.000000e+00> : vector<2x256xf32>
    %210 = tpu.matmul %205, %204, %cst_42 {dimension_numbers = #tpu.dot_dimension_numbers<[1], [0], [0], [1], [0, 0, 1, 1], [], []>} : vector<2x64xf32>, vector<64x256xf32>, vector<2x256xf32> -> vector<2x256xf32>
    %211 = arith.addf %209, %210 : vector<2x256xf32>
    %212 = arith.negf %211 : vector<2x256xf32>
    %213 = math.exp %212 : vector<2x256xf32>
    %cst_43 = arith.constant 1.000000e+00 : f32
    %214 = vector.broadcast %cst_43 : f32 to vector<2x256xf32>
    %215 = arith.addf %214, %213 : vector<2x256xf32>
    %216 = arith.divf %214, %215 : vector<2x256xf32>
    %217 = math.tanh %211 : vector<2x256xf32>
    %218 = vector.extract_strided_slice %216 {offsets = [0, 0], sizes = [2, 64], strides = [1, 1]} : vector<2x256xf32> to vector<2x64xf32>
    %219 = vector.extract_strided_slice %216 {offsets = [0, 64], sizes = [2, 64], strides = [1, 1]} : vector<2x256xf32> to vector<2x64xf32>
    %220 = vector.extract_strided_slice %217 {offsets = [0, 128], sizes = [2, 64], strides = [1, 1]} : vector<2x256xf32> to vector<2x64xf32>
    %221 = vector.extract_strided_slice %216 {offsets = [0, 192], sizes = [2, 64], strides = [1, 1]} : vector<2x256xf32> to vector<2x64xf32>
    %222 = arith.mulf %219, %206 : vector<2x64xf32>
    %223 = arith.mulf %218, %220 : vector<2x64xf32>
    %224 = arith.addf %222, %223 : vector<2x64xf32>
    %225 = math.tanh %224 : vector<2x64xf32>
    %226 = arith.mulf %221, %225 : vector<2x64xf32>
    %227 = vector.extract_strided_slice %198 {offsets = [2, 0], sizes = [2, 256], strides = [1, 1]} : vector<16x256xf32> to vector<2x256xf32>
    %228 = vector.extract_strided_slice %203 {offsets = [12, 0], sizes = [2, 256], strides = [1, 1]} : vector<16x256xf32> to vector<2x256xf32>
    %229 = arith.addf %227, %228 : vector<2x256xf32>
    %cst_44 = arith.constant dense<0.000000e+00> : vector<2x256xf32>
    %230 = tpu.matmul %226, %204, %cst_44 {dimension_numbers = #tpu.dot_dimension_numbers<[1], [0], [0], [1], [0, 0, 1, 1], [], []>} : vector<2x64xf32>, vector<64x256xf32>, vector<2x256xf32> -> vector<2x256xf32>
    %231 = arith.addf %229, %230 : vector<2x256xf32>
    %232 = arith.negf %231 : vector<2x256xf32>
    %233 = math.exp %232 : vector<2x256xf32>
    %cst_45 = arith.constant 1.000000e+00 : f32
    %234 = vector.broadcast %cst_45 : f32 to vector<2x256xf32>
    %235 = arith.addf %234, %233 : vector<2x256xf32>
    %236 = arith.divf %234, %235 : vector<2x256xf32>
    %237 = math.tanh %231 : vector<2x256xf32>
    %238 = vector.extract_strided_slice %236 {offsets = [0, 0], sizes = [2, 64], strides = [1, 1]} : vector<2x256xf32> to vector<2x64xf32>
    %239 = vector.extract_strided_slice %236 {offsets = [0, 64], sizes = [2, 64], strides = [1, 1]} : vector<2x256xf32> to vector<2x64xf32>
    %240 = vector.extract_strided_slice %237 {offsets = [0, 128], sizes = [2, 64], strides = [1, 1]} : vector<2x256xf32> to vector<2x64xf32>
    %241 = vector.extract_strided_slice %236 {offsets = [0, 192], sizes = [2, 64], strides = [1, 1]} : vector<2x256xf32> to vector<2x64xf32>
    %242 = arith.mulf %239, %224 : vector<2x64xf32>
    %243 = arith.mulf %238, %240 : vector<2x64xf32>
    %244 = arith.addf %242, %243 : vector<2x64xf32>
    %245 = math.tanh %244 : vector<2x64xf32>
    %246 = arith.mulf %241, %245 : vector<2x64xf32>
    %247 = vector.extract_strided_slice %198 {offsets = [4, 0], sizes = [2, 256], strides = [1, 1]} : vector<16x256xf32> to vector<2x256xf32>
    %248 = vector.extract_strided_slice %203 {offsets = [10, 0], sizes = [2, 256], strides = [1, 1]} : vector<16x256xf32> to vector<2x256xf32>
    %249 = arith.addf %247, %248 : vector<2x256xf32>
    %cst_46 = arith.constant dense<0.000000e+00> : vector<2x256xf32>
    %250 = tpu.matmul %246, %204, %cst_46 {dimension_numbers = #tpu.dot_dimension_numbers<[1], [0], [0], [1], [0, 0, 1, 1], [], []>} : vector<2x64xf32>, vector<64x256xf32>, vector<2x256xf32> -> vector<2x256xf32>
    %251 = arith.addf %249, %250 : vector<2x256xf32>
    %252 = arith.negf %251 : vector<2x256xf32>
    %253 = math.exp %252 : vector<2x256xf32>
    %cst_47 = arith.constant 1.000000e+00 : f32
    %254 = vector.broadcast %cst_47 : f32 to vector<2x256xf32>
    %255 = arith.addf %254, %253 : vector<2x256xf32>
    %256 = arith.divf %254, %255 : vector<2x256xf32>
    %257 = math.tanh %251 : vector<2x256xf32>
    %258 = vector.extract_strided_slice %256 {offsets = [0, 0], sizes = [2, 64], strides = [1, 1]} : vector<2x256xf32> to vector<2x64xf32>
    %259 = vector.extract_strided_slice %256 {offsets = [0, 64], sizes = [2, 64], strides = [1, 1]} : vector<2x256xf32> to vector<2x64xf32>
    %260 = vector.extract_strided_slice %257 {offsets = [0, 128], sizes = [2, 64], strides = [1, 1]} : vector<2x256xf32> to vector<2x64xf32>
    %261 = vector.extract_strided_slice %256 {offsets = [0, 192], sizes = [2, 64], strides = [1, 1]} : vector<2x256xf32> to vector<2x64xf32>
    %262 = arith.mulf %259, %244 : vector<2x64xf32>
    %263 = arith.mulf %258, %260 : vector<2x64xf32>
    %264 = arith.addf %262, %263 : vector<2x64xf32>
    %265 = math.tanh %264 : vector<2x64xf32>
    %266 = arith.mulf %261, %265 : vector<2x64xf32>
    %267 = vector.extract_strided_slice %198 {offsets = [6, 0], sizes = [2, 256], strides = [1, 1]} : vector<16x256xf32> to vector<2x256xf32>
    %268 = vector.extract_strided_slice %203 {offsets = [8, 0], sizes = [2, 256], strides = [1, 1]} : vector<16x256xf32> to vector<2x256xf32>
    %269 = arith.addf %267, %268 : vector<2x256xf32>
    %cst_48 = arith.constant dense<0.000000e+00> : vector<2x256xf32>
    %270 = tpu.matmul %266, %204, %cst_48 {dimension_numbers = #tpu.dot_dimension_numbers<[1], [0], [0], [1], [0, 0, 1, 1], [], []>} : vector<2x64xf32>, vector<64x256xf32>, vector<2x256xf32> -> vector<2x256xf32>
    %271 = arith.addf %269, %270 : vector<2x256xf32>
    %272 = arith.negf %271 : vector<2x256xf32>
    %273 = math.exp %272 : vector<2x256xf32>
    %cst_49 = arith.constant 1.000000e+00 : f32
    %274 = vector.broadcast %cst_49 : f32 to vector<2x256xf32>
    %275 = arith.addf %274, %273 : vector<2x256xf32>
    %276 = arith.divf %274, %275 : vector<2x256xf32>
    %277 = math.tanh %271 : vector<2x256xf32>
    %278 = vector.extract_strided_slice %276 {offsets = [0, 0], sizes = [2, 64], strides = [1, 1]} : vector<2x256xf32> to vector<2x64xf32>
    %279 = vector.extract_strided_slice %276 {offsets = [0, 64], sizes = [2, 64], strides = [1, 1]} : vector<2x256xf32> to vector<2x64xf32>
    %280 = vector.extract_strided_slice %277 {offsets = [0, 128], sizes = [2, 64], strides = [1, 1]} : vector<2x256xf32> to vector<2x64xf32>
    %281 = vector.extract_strided_slice %276 {offsets = [0, 192], sizes = [2, 64], strides = [1, 1]} : vector<2x256xf32> to vector<2x64xf32>
    %282 = arith.mulf %279, %264 : vector<2x64xf32>
    %283 = arith.mulf %278, %280 : vector<2x64xf32>
    %284 = arith.addf %282, %283 : vector<2x64xf32>
    %285 = math.tanh %284 : vector<2x64xf32>
    %286 = arith.mulf %281, %285 : vector<2x64xf32>
    %287 = vector.extract_strided_slice %198 {offsets = [8, 0], sizes = [2, 256], strides = [1, 1]} : vector<16x256xf32> to vector<2x256xf32>
    %288 = vector.extract_strided_slice %203 {offsets = [6, 0], sizes = [2, 256], strides = [1, 1]} : vector<16x256xf32> to vector<2x256xf32>
    %289 = arith.addf %287, %288 : vector<2x256xf32>
    %cst_50 = arith.constant dense<0.000000e+00> : vector<2x256xf32>
    %290 = tpu.matmul %286, %204, %cst_50 {dimension_numbers = #tpu.dot_dimension_numbers<[1], [0], [0], [1], [0, 0, 1, 1], [], []>} : vector<2x64xf32>, vector<64x256xf32>, vector<2x256xf32> -> vector<2x256xf32>
    %291 = arith.addf %289, %290 : vector<2x256xf32>
    %292 = arith.negf %291 : vector<2x256xf32>
    %293 = math.exp %292 : vector<2x256xf32>
    %cst_51 = arith.constant 1.000000e+00 : f32
    %294 = vector.broadcast %cst_51 : f32 to vector<2x256xf32>
    %295 = arith.addf %294, %293 : vector<2x256xf32>
    %296 = arith.divf %294, %295 : vector<2x256xf32>
    %297 = math.tanh %291 : vector<2x256xf32>
    %298 = vector.extract_strided_slice %296 {offsets = [0, 0], sizes = [2, 64], strides = [1, 1]} : vector<2x256xf32> to vector<2x64xf32>
    %299 = vector.extract_strided_slice %296 {offsets = [0, 64], sizes = [2, 64], strides = [1, 1]} : vector<2x256xf32> to vector<2x64xf32>
    %300 = vector.extract_strided_slice %297 {offsets = [0, 128], sizes = [2, 64], strides = [1, 1]} : vector<2x256xf32> to vector<2x64xf32>
    %301 = vector.extract_strided_slice %296 {offsets = [0, 192], sizes = [2, 64], strides = [1, 1]} : vector<2x256xf32> to vector<2x64xf32>
    %302 = arith.mulf %299, %284 : vector<2x64xf32>
    %303 = arith.mulf %298, %300 : vector<2x64xf32>
    %304 = arith.addf %302, %303 : vector<2x64xf32>
    %305 = math.tanh %304 : vector<2x64xf32>
    %306 = arith.mulf %301, %305 : vector<2x64xf32>
    %307 = vector.extract_strided_slice %198 {offsets = [10, 0], sizes = [2, 256], strides = [1, 1]} : vector<16x256xf32> to vector<2x256xf32>
    %308 = vector.extract_strided_slice %203 {offsets = [4, 0], sizes = [2, 256], strides = [1, 1]} : vector<16x256xf32> to vector<2x256xf32>
    %309 = arith.addf %307, %308 : vector<2x256xf32>
    %cst_52 = arith.constant dense<0.000000e+00> : vector<2x256xf32>
    %310 = tpu.matmul %306, %204, %cst_52 {dimension_numbers = #tpu.dot_dimension_numbers<[1], [0], [0], [1], [0, 0, 1, 1], [], []>} : vector<2x64xf32>, vector<64x256xf32>, vector<2x256xf32> -> vector<2x256xf32>
    %311 = arith.addf %309, %310 : vector<2x256xf32>
    %312 = arith.negf %311 : vector<2x256xf32>
    %313 = math.exp %312 : vector<2x256xf32>
    %cst_53 = arith.constant 1.000000e+00 : f32
    %314 = vector.broadcast %cst_53 : f32 to vector<2x256xf32>
    %315 = arith.addf %314, %313 : vector<2x256xf32>
    %316 = arith.divf %314, %315 : vector<2x256xf32>
    %317 = math.tanh %311 : vector<2x256xf32>
    %318 = vector.extract_strided_slice %316 {offsets = [0, 0], sizes = [2, 64], strides = [1, 1]} : vector<2x256xf32> to vector<2x64xf32>
    %319 = vector.extract_strided_slice %316 {offsets = [0, 64], sizes = [2, 64], strides = [1, 1]} : vector<2x256xf32> to vector<2x64xf32>
    %320 = vector.extract_strided_slice %317 {offsets = [0, 128], sizes = [2, 64], strides = [1, 1]} : vector<2x256xf32> to vector<2x64xf32>
    %321 = vector.extract_strided_slice %316 {offsets = [0, 192], sizes = [2, 64], strides = [1, 1]} : vector<2x256xf32> to vector<2x64xf32>
    %322 = arith.mulf %319, %304 : vector<2x64xf32>
    %323 = arith.mulf %318, %320 : vector<2x64xf32>
    %324 = arith.addf %322, %323 : vector<2x64xf32>
    %325 = math.tanh %324 : vector<2x64xf32>
    %326 = arith.mulf %321, %325 : vector<2x64xf32>
    %327 = vector.extract_strided_slice %198 {offsets = [12, 0], sizes = [2, 256], strides = [1, 1]} : vector<16x256xf32> to vector<2x256xf32>
    %328 = vector.extract_strided_slice %203 {offsets = [2, 0], sizes = [2, 256], strides = [1, 1]} : vector<16x256xf32> to vector<2x256xf32>
    %329 = arith.addf %327, %328 : vector<2x256xf32>
    %cst_54 = arith.constant dense<0.000000e+00> : vector<2x256xf32>
    %330 = tpu.matmul %326, %204, %cst_54 {dimension_numbers = #tpu.dot_dimension_numbers<[1], [0], [0], [1], [0, 0, 1, 1], [], []>} : vector<2x64xf32>, vector<64x256xf32>, vector<2x256xf32> -> vector<2x256xf32>
    %331 = arith.addf %329, %330 : vector<2x256xf32>
    %332 = arith.negf %331 : vector<2x256xf32>
    %333 = math.exp %332 : vector<2x256xf32>
    %cst_55 = arith.constant 1.000000e+00 : f32
    %334 = vector.broadcast %cst_55 : f32 to vector<2x256xf32>
    %335 = arith.addf %334, %333 : vector<2x256xf32>
    %336 = arith.divf %334, %335 : vector<2x256xf32>
    %337 = math.tanh %331 : vector<2x256xf32>
    %338 = vector.extract_strided_slice %336 {offsets = [0, 0], sizes = [2, 64], strides = [1, 1]} : vector<2x256xf32> to vector<2x64xf32>
    %339 = vector.extract_strided_slice %336 {offsets = [0, 64], sizes = [2, 64], strides = [1, 1]} : vector<2x256xf32> to vector<2x64xf32>
    %340 = vector.extract_strided_slice %337 {offsets = [0, 128], sizes = [2, 64], strides = [1, 1]} : vector<2x256xf32> to vector<2x64xf32>
    %341 = vector.extract_strided_slice %336 {offsets = [0, 192], sizes = [2, 64], strides = [1, 1]} : vector<2x256xf32> to vector<2x64xf32>
    %342 = arith.mulf %339, %324 : vector<2x64xf32>
    %343 = arith.mulf %338, %340 : vector<2x64xf32>
    %344 = arith.addf %342, %343 : vector<2x64xf32>
    %345 = math.tanh %344 : vector<2x64xf32>
    %346 = arith.mulf %341, %345 : vector<2x64xf32>
    %347 = vector.extract_strided_slice %198 {offsets = [14, 0], sizes = [2, 256], strides = [1, 1]} : vector<16x256xf32> to vector<2x256xf32>
    %348 = vector.extract_strided_slice %203 {offsets = [0, 0], sizes = [2, 256], strides = [1, 1]} : vector<16x256xf32> to vector<2x256xf32>
    %349 = arith.addf %347, %348 : vector<2x256xf32>
    %cst_56 = arith.constant dense<0.000000e+00> : vector<2x256xf32>
    %350 = tpu.matmul %346, %204, %cst_56 {dimension_numbers = #tpu.dot_dimension_numbers<[1], [0], [0], [1], [0, 0, 1, 1], [], []>} : vector<2x64xf32>, vector<64x256xf32>, vector<2x256xf32> -> vector<2x256xf32>
    %351 = arith.addf %349, %350 : vector<2x256xf32>
    %352 = arith.negf %351 : vector<2x256xf32>
    %353 = math.exp %352 : vector<2x256xf32>
    %cst_57 = arith.constant 1.000000e+00 : f32
    %354 = vector.broadcast %cst_57 : f32 to vector<2x256xf32>
    %355 = arith.addf %354, %353 : vector<2x256xf32>
    %356 = arith.divf %354, %355 : vector<2x256xf32>
    %357 = math.tanh %351 : vector<2x256xf32>
    %358 = vector.extract_strided_slice %356 {offsets = [0, 0], sizes = [2, 64], strides = [1, 1]} : vector<2x256xf32> to vector<2x64xf32>
    %359 = vector.extract_strided_slice %356 {offsets = [0, 64], sizes = [2, 64], strides = [1, 1]} : vector<2x256xf32> to vector<2x64xf32>
    %360 = vector.extract_strided_slice %357 {offsets = [0, 128], sizes = [2, 64], strides = [1, 1]} : vector<2x256xf32> to vector<2x64xf32>
    %361 = vector.extract_strided_slice %356 {offsets = [0, 192], sizes = [2, 64], strides = [1, 1]} : vector<2x256xf32> to vector<2x64xf32>
    %362 = arith.mulf %359, %344 : vector<2x64xf32>
    %363 = arith.mulf %358, %360 : vector<2x64xf32>
    %364 = arith.addf %362, %363 : vector<2x64xf32>
    %365 = math.tanh %364 : vector<2x64xf32>
    %366 = arith.mulf %361, %365 : vector<2x64xf32>
    %367 = vector.extract_strided_slice %170 {offsets = [0, 0], sizes = [2, 32], strides = [1, 1]} : vector<2x64xf32> to vector<2x32xf32>
    %368 = vector.extract_strided_slice %170 {offsets = [0, 32], sizes = [2, 32], strides = [1, 1]} : vector<2x64xf32> to vector<2x32xf32>
    %369 = vector.extract_strided_slice %366 {offsets = [0, 0], sizes = [2, 32], strides = [1, 1]} : vector<2x64xf32> to vector<2x32xf32>
    %370 = vector.extract_strided_slice %366 {offsets = [0, 32], sizes = [2, 32], strides = [1, 1]} : vector<2x64xf32> to vector<2x32xf32>
    %c0_58 = arith.constant 0 : index
    %c0_59 = arith.constant 0 : index
    %371 = vector.load %arg9[%c0_58, %c0_59] : memref<128x4xf32, #tpu.memory_space<vmem>>, vector<128x4xf32>
    %cst_60 = arith.constant 0.000000e+00 : f32
    %372 = vector.broadcast %cst_60 : f32 to vector<2x4xf32>
    %c0_61 = arith.constant 0 : index
    %c0_62 = arith.constant 0 : index
    %373 = vector.load %arg10[%c0_61, %c0_62] : memref<1x4xf32, #tpu.memory_space<vmem>>, vector<1x4xf32>
    %374 = vector.broadcast %373 : vector<1x4xf32> to vector<2x4xf32>
    %375 = arith.addf %372, %374 : vector<2x4xf32>
    %376 = vector.extract_strided_slice %367 {offsets = [0, 0], sizes = [1, 32], strides = [1, 1]} : vector<2x32xf32> to vector<1x32xf32>
    %377 = vector.extract_strided_slice %369 {offsets = [0, 0], sizes = [1, 32], strides = [1, 1]} : vector<2x32xf32> to vector<1x32xf32>
    %378 = tpu.concatenate %376, %377 in 0 : vector<1x32xf32>, vector<1x32xf32> -> vector<2x32xf32>
    %cst_63 = arith.constant 0.000000e+00 : f32
    %379 = vector.broadcast %cst_63 : f32 to vector<2x32xf32>
    %380 = arith.maximumf %378, %379 : vector<2x32xf32>
    %381 = vector.extract_strided_slice %371 {offsets = [0, 0], sizes = [32, 4], strides = [1, 1]} : vector<128x4xf32> to vector<32x4xf32>
    %cst_64 = arith.constant dense<0.000000e+00> : vector<2x4xf32>
    %382 = tpu.matmul %380, %381, %cst_64 {dimension_numbers = #tpu.dot_dimension_numbers<[1], [0], [0], [1], [0, 0, 1, 1], [], []>} : vector<2x32xf32>, vector<32x4xf32>, vector<2x4xf32> -> vector<2x4xf32>
    %383 = arith.addf %375, %382 : vector<2x4xf32>
    %384 = vector.extract_strided_slice %367 {offsets = [1, 0], sizes = [1, 32], strides = [1, 1]} : vector<2x32xf32> to vector<1x32xf32>
    %385 = vector.extract_strided_slice %369 {offsets = [1, 0], sizes = [1, 32], strides = [1, 1]} : vector<2x32xf32> to vector<1x32xf32>
    %386 = tpu.concatenate %384, %385 in 0 : vector<1x32xf32>, vector<1x32xf32> -> vector<2x32xf32>
    %cst_65 = arith.constant 0.000000e+00 : f32
    %387 = vector.broadcast %cst_65 : f32 to vector<2x32xf32>
    %388 = arith.maximumf %386, %387 : vector<2x32xf32>
    %389 = vector.extract_strided_slice %371 {offsets = [32, 0], sizes = [32, 4], strides = [1, 1]} : vector<128x4xf32> to vector<32x4xf32>
    %cst_66 = arith.constant dense<0.000000e+00> : vector<2x4xf32>
    %390 = tpu.matmul %388, %389, %cst_66 {dimension_numbers = #tpu.dot_dimension_numbers<[1], [0], [0], [1], [0, 0, 1, 1], [], []>} : vector<2x32xf32>, vector<32x4xf32>, vector<2x4xf32> -> vector<2x4xf32>
    %391 = arith.addf %383, %390 : vector<2x4xf32>
    %392 = vector.extract_strided_slice %368 {offsets = [0, 0], sizes = [1, 32], strides = [1, 1]} : vector<2x32xf32> to vector<1x32xf32>
    %393 = vector.extract_strided_slice %370 {offsets = [0, 0], sizes = [1, 32], strides = [1, 1]} : vector<2x32xf32> to vector<1x32xf32>
    %394 = tpu.concatenate %392, %393 in 0 : vector<1x32xf32>, vector<1x32xf32> -> vector<2x32xf32>
    %cst_67 = arith.constant 0.000000e+00 : f32
    %395 = vector.broadcast %cst_67 : f32 to vector<2x32xf32>
    %396 = arith.maximumf %394, %395 : vector<2x32xf32>
    %397 = vector.extract_strided_slice %371 {offsets = [64, 0], sizes = [32, 4], strides = [1, 1]} : vector<128x4xf32> to vector<32x4xf32>
    %cst_68 = arith.constant dense<0.000000e+00> : vector<2x4xf32>
    %398 = tpu.matmul %396, %397, %cst_68 {dimension_numbers = #tpu.dot_dimension_numbers<[1], [0], [0], [1], [0, 0, 1, 1], [], []>} : vector<2x32xf32>, vector<32x4xf32>, vector<2x4xf32> -> vector<2x4xf32>
    %399 = arith.addf %391, %398 : vector<2x4xf32>
    %400 = vector.extract_strided_slice %368 {offsets = [1, 0], sizes = [1, 32], strides = [1, 1]} : vector<2x32xf32> to vector<1x32xf32>
    %401 = vector.extract_strided_slice %370 {offsets = [1, 0], sizes = [1, 32], strides = [1, 1]} : vector<2x32xf32> to vector<1x32xf32>
    %402 = tpu.concatenate %400, %401 in 0 : vector<1x32xf32>, vector<1x32xf32> -> vector<2x32xf32>
    %cst_69 = arith.constant 0.000000e+00 : f32
    %403 = vector.broadcast %cst_69 : f32 to vector<2x32xf32>
    %404 = arith.maximumf %402, %403 : vector<2x32xf32>
    %405 = vector.extract_strided_slice %371 {offsets = [96, 0], sizes = [32, 4], strides = [1, 1]} : vector<128x4xf32> to vector<32x4xf32>
    %cst_70 = arith.constant dense<0.000000e+00> : vector<2x4xf32>
    %406 = tpu.matmul %404, %405, %cst_70 {dimension_numbers = #tpu.dot_dimension_numbers<[1], [0], [0], [1], [0, 0, 1, 1], [], []>} : vector<2x32xf32>, vector<32x4xf32>, vector<2x4xf32> -> vector<2x4xf32>
    %407 = arith.addf %399, %406 : vector<2x4xf32>
    %c0_71 = arith.constant 0 : index
    %c0_72 = arith.constant 0 : index
    %408 = vector.load %arg11[%c0_71, %c0_72] : memref<2x4xf32, #tpu.memory_space<vmem>>, vector<2x4xf32>
    tpu.vector_store %arg11[%c0_71, %c0_72], %407 {strides = array<i32>} : memref<2x4xf32, #tpu.memory_space<vmem>>, vector<2x4xf32>,
    return
  }
}

</mosaic_0001>

<bundles_post_ra>
// kernel: lstm_bibatch_forward.1
= control target key start
LH: loop header
LB: loop body
LE: loop exit
PB: predicated region body
PF: predicated region fallthrough
CT: control target
= control target key end

     0   :  { %vm55_vm0 = vcmask 64512   ;;  %v3462_v6 = vmov 0.0   ;;  %s4212_s0 = inlined_call_operand.vmem [shape: f32[16,8], index: 0, kind: input, shape index: {}]   ;;  %s4213_s1 = inlined_call_operand.vmem [shape: f32[8,256], index: 1, kind: input, shape index: {}]   ;;  %s4214_s2 = inlined_call_operand.vmem [shape: f32[8,256], index: 2, kind: input, shape index: {}]   ;;  %s4215_s3 = inlined_call_operand.vmem [shape: f32[1,256], index: 3, kind: input, shape index: {}]   ;;  %s4216_s4 = inlined_call_operand.vmem [shape: f32[64,256], index: 4, kind: input, shape index: {}]   ;;  %s4217_s5 = inlined_call_operand.vmem [shape: f32[64,256], index: 5, kind: input, shape index: {}]   ;;  %s4218_s6 = inlined_call_operand.vmem [shape: f32[64,256], index: 6, kind: input, shape index: {}]   ;;  %s4219_s7 = inlined_call_operand.vmem [shape: f32[1,256], index: 7, kind: input, shape index: {}]   ;;  %s4220_s8 = inlined_call_operand.vmem [shape: f32[64,256], index: 8, kind: input, shape index: {}]   ;;  %s4221_s9 = inlined_call_operand.vmem [shape: f32[128,4], index: 9, kind: input, shape index: {}]   ;;  %s4222_s10 = inlined_call_operand.vmem [shape: f32[1,4], index: 10, kind: input, shape index: {}]   ;;  %s4223_s11 = inlined_call_operand.hbm [shape: f32[2,4], index: 11, kind: output, shape index: {}]  }
   0x1   :  { %v42_v0 = vld [vmem:[%s4213_s1 + $0x8] sm:$0xff]  ;;  %v41_v2 = vld [vmem:[%s4213_s1] sm:$0xff]  ;;  %126 = vmatprep.mubr.f32.mxu0 %v3462_v6  ;;  %v221_v7 = vld [vmem:[%s4216_s4 + $0x18] sm:$0xff]  ;;  %205 = vmatprep.mubr.f32.mxu1 %v3462_v6 }
   0x2   :  { %v140_v1 = vld [vmem:[%s4214_s2 + $0x8] sm:$0xff]  ;;  %62 = vmatprep.subr.mxu0 %v42_v0  ;;  %v139_v3 = vld [vmem:[%s4214_s2] sm:$0xff]  ;;  %v220_v9 = vld [vmem:[%s4216_s4 + $0x10] sm:$0xff] }
   0x3   :  { %141 = vmatprep.subr.mxu1 %v140_v1  ;;  %v39_v4 = vld [vmem:[%s4212_s0] sm:$0xff]  ;;  %v219_v5 = vld [vmem:[%s4216_s4 + $0x8] sm:$0xff]  ;;  %63 = vmatpush1.msra.mxu0 %v41_v2  ;;  %v225_v13 = vld [vmem:[%s4216_s4 + $0x38] sm:$0xff] }
   0x4   :  { %v218_v8 = vld [vmem:[%s4216_s4] sm:$0xff]  ;;  %142 = vmatpush1.msra.mxu1 %v139_v3  ;;  %v3557_v10 = vpack.c.bf16 %v221_v7, %v219_v5  ;;  %v223_v12 = vld [vmem:[%s4216_s4 + $0x28] sm:$0xff]  ;;  %2786 = vmatmul.mubr.msk.f32.vlgmr.msra.gmra.mrb[0].mxu0 %vm55_vm0, %v39_v4  ;;  %v224_v16 = vld [vmem:[%s4216_s4 + $0x30] sm:$0xff] }
   0x5   :  { %v3559_v11 = vpack.c.bf16 %v220_v9, %v218_v8  ;;  %2788 = vmatmul.mubr.msk.f32.vlgmr.msra.gmra.mrb[0].mxu1 %vm55_vm0, %v39_v4  ;;  %v3569_v14 = vpack.c.bf16 %v225_v13, %v223_v12  ;;  %v222_v15 = vld [vmem:[%s4216_s4 + $0x20] sm:$0xff]  ;;  %v227_v17 = vld [vmem:[%s4216_s4 + $0x48] sm:$0xff]  ;;  %132 = vmatprep.mubr.f32.mxu0 %v3462_v6  ;;  %v229_v19 = vld [vmem:[%s4216_s4 + $0x58] sm:$0xff] }
   0x6   :  { %2914 = vmatprep.subr.bf16.mxu1 %v3557_v10  ;;  %v40_v18 = vld [vmem:[%s4212_s0 + $0x8] sm:$0xff]  ;;  %v3589_v20 = vpack.c.bf16 %v224_v16, %v222_v15  ;;  %211 = vmatprep.mubr.f32.mxu1 %v3462_v6  ;;  %v3593_v21 = vpack.c.bf16 %v229_v19, %v227_v17  ;;  %v226_v22 = vld [vmem:[%s4216_s4 + $0x40] sm:$0xff]  ;;  %v228_v23 = vld [vmem:[%s4216_s4 + $0x50] sm:$0xff] }
   0x7   :  { %2916 = vmatpush1.bf16.msra.mxu1 %v3559_v11  ;;  %2946 = vmatprep.subr.bf16.mxu0 %v3557_v10 }
   0x8   :  { %2918 = vmatprep.subr.bf16.mxu1 %v3569_v14 }
   0x9   :  { %16 = vsyncpa [#allocation3], 0  ;;  %2787 = vmatmul.mubr.msk.f32.gmra.mrb[2].mxu0 %vm55_vm0, %v40_v18  ;;  %2789 = vmatmul.mubr.msk.f32.gmra.mrb[2].mxu1 %vm55_vm0, %v40_v18  ;;  %v231_v24 = vld [vmem:[%s4216_s4 + $0x68] sm:$0xff]  ;;  %v233_v25 = vld [vmem:[%s4216_s4 + $0x78] sm:$0xff]  ;;  %v3613_v26 = vpack.c.bf16 %v228_v23, %v226_v22  ;;  %v45_v31 = vlaneseq  ;;  %vm242_vm1 = vcmask 523264   ;;  %vm1123_vm2 = vcmask 1041408  }
   0xa   :  { %310 = vmatprep.mubr.f32.mxu1 %v3462_v6  ;;  %2948 = vmatpush1.bf16.msra.mxu0 %v3559_v11  ;;  %v3617_v27 = vpack.c.bf16 %v233_v25, %v231_v24  ;;  %v230_v28 = vld [vmem:[%s4216_s4 + $0x60] sm:$0xff]  ;;  %v232_v29 = vld [vmem:[%s4216_s4 + $0x70] sm:$0xff]  ;;  %vm1125_vm3 = vcmask 1043456   ;;  %vm1127_vm4 = vcmask 1045504   ;;  %s3464_s19 = smov 32   ;;  %vm1192_vm5 = vcmask 261120  }
   0xb   :  { %2920 = vmatpush1.bf16.msra.mxu1 %v3589_v20  ;;  %2950 = vmatprep.subr.bf16.mxu0 %v3569_v14  ;;  %v3628_v30 = vpack.c.bf16 %v232_v29, %v230_v28  ;;  %v3648_v32 = vshrl.u32 %v45_v31, 7  ;;  %v43_v34 = vld [vmem:[%s4215_s3] sm:$0x3]  ;;  %s3463_s3 = smov 64   ;;  %vm3466_vm6 = vmmov 0   ;;  %vm2459_vm7 = vcmask 1040384  }
   0xc   :  { %2922 = vmatprep.subr.bf16.mxu1 %v3593_v21  ;;  %526 = vmatprep.mubr.f32.mxu0 %v3462_v6  ;;  %s3467_s29 = smov [#allocation2]   ;;  %vm2770_vm8 = vcmask 25600  }
   0xd   :  { %v47_v33 = vsub.s32 0, %v3648_v32  ;;  %v51_v35 = vsub.s32 1, %v3648_v32 }
   0xe   :  { %2952 = vmatpush1.bf16.msra.mxu0 %v3589_v20 }
   0xf   :  { %2924 = vmatpush1.bf16.msra.mxu1 %v3613_v26  ;;  %2954 = vmatprep.subr.bf16.mxu0 %v3593_v21  ;;  %v48_v39 = vrot.slane %v43_v34, %v47_v33  ;;  %v52_v41 = vrot.slane %v43_v34, %v51_v35 }
  0x10   :  { %2926 = vmatprep.subr.bf16.mxu1 %v3617_v27 }
  0x12   :  { %2956 = vmatpush1.bf16.msra.mxu0 %v3613_v26 }
  0x13   :  { %2928 = vmatpush1.bf16.msra.mxu1 %v3628_v30  ;;  %2958 = vmatprep.subr.bf16.mxu0 %v3617_v27 }
  0x14   :  { %2930 = vmatprep.subr.bf16.mxu1 %v3557_v10 }
  0x16   :  { %311 = vmatmul.mubr.f32.vlgmr.msra.gmra.mrb[4].mxu1 %v3462_v6  ;;  %2960 = vmatpush1.bf16.msra.mxu0 %v3628_v30 }
  0x17   :  { %2932 = vmatpush1.bf16.msra.mxu1 %v3559_v11  ;;  %416 = vmatprep.mubr.f32.mxu1 %v3462_v6 }
  0x18   :  { %2934 = vmatprep.subr.bf16.mxu1 %v3569_v14  ;;  %2978 = vmatprep.subr.bf16.mxu0 %v3557_v10 }
  0x1b   :  { %2936 = vmatpush1.bf16.msra.mxu1 %v3589_v20 }
  0x1c   :  { %2938 = vmatprep.subr.bf16.mxu1 %v3593_v21 }
  0x1f   :  { %2940 = vmatpush1.bf16.msra.mxu1 %v3613_v26 }
  0x20   :  { %2942 = vmatprep.subr.bf16.mxu1 %v3617_v27 }
  0x23   :  { %2944 = vmatpush1.bf16.msra.mxu1 %v3628_v30 }
  0x24   :  { %2962 = vmatprep.subr.bf16.mxu1 %v3557_v10 }
  0xd7   :  { %v128_v37 = vpop.f32.mrb[0].mxu0 }
  0xd8   :  { %v207_v36 = vpop.f32.mrb[0].mxu1  ;;  %v130_v40 = vpop.f32.mrb[1].mxu0  ;;  %v129_v42 = vadd.f32 %v128_v37, %v48_v39 }
  0xd9   :  { %v209_v38 = vpop.f32.mrb[1].mxu1  ;;  %v678_v43 = vrot.slane %v207_v36, 6  ;;  %v788_v44 = vrot.slane %v207_v36, 2  ;;  %v131_v45 = vadd.f32 %v130_v40, %v52_v41 }
  0xda   :  { %v679_v48 = vrot.slane %v209_v38, 6  ;;  %v789_v54 = vrot.slane %v209_v38, 2 }
  0xdc   :  { %v134_v46 = vpop.f32.mrb[2].mxu0  ;;  %v213_v47 = vpop.f32.mrb[2].mxu1 }
  0xdd   :  { %v135_v49 = vadd.f32 %v134_v46, %v48_v39  ;;  %v136_v50 = vpop.f32.mrb[3].mxu0  ;;  %v236_v51 = vrot.slane %v213_v47, 6  ;;  %v341_v52 = vrot.slane %v213_v47, 2  ;;  %v215_v53 = vpop.f32.mrb[3].mxu1 }
  0xde   :  { %v137_v55 = vadd.f32 %v136_v50, %v52_v41  ;;  %v237_v56 = vrot.slane %v215_v53, 6  ;;  %v342_v57 = vrot.slane %v215_v53, 2 }
  0xdf   :  { %v3659_v58 = vadd.f32 %v788_v44, %v135_v49  ;;  %v3661_v59 = vadd.f32 %v341_v52, %v129_v42  ;;  %v3663_v60 = vadd.f32 %v236_v51, %v129_v42  ;;  %v3665_v61 = vadd.f32 %v678_v43, %v135_v49 }
  0xe0   :  { %v3667_v62 = vadd.f32 %v789_v54, %v137_v55  ;;  %v3669_v63 = vadd.f32 %v342_v57, %v131_v45  ;;  %v3671_v0 = vadd.f32 %v237_v56, %v131_v45  ;;  %v3673_v1 = vadd.f32 %v679_v48, %v137_v55 }
  0xe9   :  { %v312_v2 = vpop.f32.mrb[4].mxu1 }
  0xea   :  { %v317_v3 = vadd.f32 %v312_v2, %v3663_v60  ;;  %v314_v4 = vpop.f32.mrb[5].mxu1 }
  0xeb   :  { %v318_v7 = vadd.f32 %v314_v4, %v3671_v0 }
  0xec   :  { %v2790_v5 = vmul.f32 -1.442695, %v317_v3 }
  0xed   :  { %v2791_v16 = vmul.f32 -1.442695, %v318_v7 }
  0xee   :  { %3246 = vpow2.f32 %v2790_v5 }
  0xef   :  { %3248 = vtanh.f32 %v318_v7 }
  0xf8   :  { %v3247_v8 = vpop.eup %3246 }
  0xf9   :  { %v325_v9 = vadd.f32 1.0, %v3247_v8  ;;  %v3249_v12 = vpop.eup %3248 }
  0xfb   :  { %3250 = vrcp.f32 %v325_v9 }
  0xfc   :  { %3252 = vpow2.f32 %v2791_v16 }
 0x105   :  { %v3251_v13 = vpop.eup %3250 }
 0x106   :  { %v333_v15 = vmul.f32 %v3251_v13, %v3249_v12  ;;  %v3253_v17 = vpop.eup %3252  ;;  %v332_v19 = vmul.f32 0.0, %v3251_v13 }
 0x107   :  { %v326_v18 = vadd.f32 1.0, %v3253_v17 }
 0x108   :  { %335 = vrot.lane.b32.xlu0 %v333_v15, %s3463_s3 }
 0x109   :  { %3254 = vrcp.f32 %v326_v18 }
 0x113   :  { %v3255_v24 = vpop.eup %3254 }
 0x17a   :  { %v336_v22 = vpop.permute.xlu0 %335 }
 0x17b   :  { %v338_v23 = vadd.f32 %v336_v22, %v332_v19 }
 0x17d   :  { %3256 = vtanh.f32 %v338_v23  ;;  %v445_v44 = vrot.slane %v338_v23, 6 }
 0x187   :  { %v3257_v25 = vpop.eup %3256 }
 0x188   :  { %v3678_v28 = vmul.f32 %v3257_v25, %v3255_v24 }
 0x18a   :  { %348 = vrot.lane.b32.xlu0 %v3678_v28, %s3463_s3 }
 0x1fc   :  { %v349_v29 = vpop.permute.xlu0 %348 }
 0x1fd   :  { %2792 = vmatmul.mubr.msk.f32.vlgmr.msra.gmra.mrb[6].mxu1 %vm242_vm1, %v349_v29 }
 0x1fe   :  { %2964 = vmatpush1.bf16.msra.mxu1 %v3559_v11  ;;  %636 = vmatprep.mubr.f32.mxu1 %v3462_v6 }
 0x1ff   :  { %2966 = vmatprep.subr.bf16.mxu1 %v3569_v14 }
 0x202   :  { %2968 = vmatpush1.bf16.msra.mxu1 %v3589_v20 }
 0x203   :  { %2970 = vmatprep.subr.bf16.mxu1 %v3593_v21 }
 0x206   :  { %2972 = vmatpush1.bf16.msra.mxu1 %v3613_v26 }
 0x207   :  { %2974 = vmatprep.subr.bf16.mxu1 %v3617_v27 }
 0x20a   :  { %2976 = vmatpush1.bf16.msra.mxu1 %v3628_v30 }
 0x20b   :  { %2994 = vmatprep.subr.bf16.mxu1 %v3557_v10 }
 0x2d0   :  { %v418_v31 = vpop.f32.mrb[6].mxu1 }
 0x2d1   :  { %v425_v34 = vrot.slane %v418_v31, 6  ;;  %v420_v36 = vpop.f32.mrb[7].mxu1 }
 0x2d2   :  { %v426_v39 = vrot.slane %v420_v36, 6 }
 0x2d3   :  { %v429_v37 = vadd.f32 %v425_v34, %v3661_v59 }
 0x2d4   :  { %v430_v40 = vadd.f32 %v426_v39, %v3669_v63 }
 0x2d5   :  { %v2793_v38 = vmul.f32 -1.442695, %v429_v37 }
 0x2d6   :  { %v2794_v48 = vmul.f32 -1.442695, %v430_v40 }
 0x2d7   :  { %3258 = vpow2.f32 %v2793_v38 }
 0x2d8   :  { %3260 = vtanh.f32 %v430_v40 }
 0x2e1   :  { %v3259_v41 = vpop.eup %3258 }
 0x2e2   :  { %v437_v42 = vadd.f32 1.0, %v3259_v41  ;;  %v3261_v43 = vpop.eup %3260 }
 0x2e4   :  { %3262 = vrcp.f32 %v437_v42 }
 0x2e5   :  { %3264 = vpow2.f32 %v2794_v48 }
 0x2ee   :  { %v3263_v45 = vpop.eup %3262 }
 0x2ef   :  { %v448_v46 = vmul.f32 %v3263_v45, %v3261_v43  ;;  %v447_v47 = vmul.f32 %v3263_v45, %v445_v44  ;;  %v3265_v49 = vpop.eup %3264 }
 0x2f0   :  { %v438_v50 = vadd.f32 1.0, %v3265_v49 }
 0x2f1   :  { %450 = vrot.lane.b32.xlu1 %v448_v46, %s3463_s3 }
 0x2f2   :  { %3266 = vrcp.f32 %v438_v50 }
 0x2fc   :  { %v3267_v53 = vpop.eup %3266 }
 0x363   :  { %v451_v51 = vpop.permute.xlu1 %450 }
 0x364   :  { %v453_v52 = vadd.f32 %v451_v51, %v447_v47 }
 0x366   :  { %3268 = vtanh.f32 %v453_v52  ;;  %v555_v16 = vrot.slane %v453_v52, 6 }
 0x370   :  { %v3269_v54 = vpop.eup %3268 }
 0x371   :  { %v3695_v55 = vmul.f32 %v3269_v54, %v3267_v53 }
 0x373   :  { %v457_v56 = vrot.slane %v3695_v55, 2  ;;  %v1124_v34 = vsel %vm1123_vm2, %v3678_v28, %v3695_v55 }
 0x375   :  { %458 = vrot.lane.b32.xlu1 %v457_v56, %s3463_s3 }
 0x3e7   :  { %v459_v57 = vpop.permute.xlu1 %458 }
 0x3e8   :  { %2795 = vmatmul.mubr.msk.f32.vlgmr.msra.gmra.mrb[4].mxu0 %vm242_vm1, %v459_v57 }
 0x3e9   :  { %2980 = vmatpush1.bf16.msra.mxu0 %v3559_v11  ;;  %754 = vmatprep.mubr.f32.mxu0 %v3462_v6 }
 0x3ea   :  { %2982 = vmatprep.subr.bf16.mxu0 %v3569_v14 }
 0x3ed   :  { %2984 = vmatpush1.bf16.msra.mxu0 %v3589_v20 }
 0x3ee   :  { %2986 = vmatprep.subr.bf16.mxu0 %v3593_v21 }
 0x3f1   :  { %2988 = vmatpush1.bf16.msra.mxu0 %v3613_v26 }
 0x3f2   :  { %2990 = vmatprep.subr.bf16.mxu0 %v3617_v27 }
 0x3f5   :  { %2992 = vmatpush1.bf16.msra.mxu0 %v3628_v30 }
 0x3f6   :  { %3010 = vmatprep.subr.bf16.mxu0 %v3557_v10 }
 0x4bb   :  { %v528_v2 = vpop.f32.mrb[4].mxu0 }
 0x4bc   :  { %v535_v3 = vrot.slane %v528_v2, 4  ;;  %v530_v4 = vpop.f32.mrb[5].mxu0 }
 0x4bd   :  { %v536_v8 = vrot.slane %v530_v4, 4 }
 0x4be   :  { %v539_v5 = vadd.f32 %v535_v3, %v3663_v60 }
 0x4bf   :  { %v540_v9 = vadd.f32 %v536_v8, %v3671_v0 }
 0x4c0   :  { %v2796_v7 = vmul.f32 -1.442695, %v539_v5 }
 0x4c1   :  { %v2797_v22 = vmul.f32 -1.442695, %v540_v9 }
 0x4c2   :  { %3270 = vpow2.f32 %v2796_v7  ;;  %v1144_v7 = vrot.slane %v3695_v55, 6 }
 0x4c3   :  { %3272 = vtanh.f32 %v540_v9 }
 0x4cc   :  { %v3271_v12 = vpop.eup %3270 }
 0x4cd   :  { %v547_v13 = vadd.f32 1.0, %v3271_v12  ;;  %v3273_v15 = vpop.eup %3272 }
 0x4cf   :  { %3274 = vrcp.f32 %v547_v13 }
 0x4d0   :  { %3276 = vpow2.f32 %v2797_v22 }
 0x4d9   :  { %v3275_v17 = vpop.eup %3274 }
 0x4da   :  { %v558_v18 = vmul.f32 %v3275_v17, %v3273_v15  ;;  %v557_v19 = vmul.f32 %v3275_v17, %v555_v16  ;;  %v3277_v23 = vpop.eup %3276 }
 0x4db   :  { %v548_v60 = vadd.f32 1.0, %v3277_v23 }
 0x4dc   :  { %560 = vrot.lane.b32.xlu0 %v558_v18, %s3463_s3 }
 0x4dd   :  { %3278 = vrcp.f32 %v548_v60 }
 0x4e7   :  { %v3279_v0 = vpop.eup %3278 }
 0x54e   :  { %v561_v24 = vpop.permute.xlu0 %560 }
 0x54f   :  { %v563_v25 = vadd.f32 %v561_v24, %v557_v19 }
 0x551   :  { %3280 = vtanh.f32 %v563_v25  ;;  %v665_v49 = vrot.slane %v563_v25, 6 }
 0x55b   :  { %v3281_v29 = vpop.eup %3280 }
 0x55c   :  { %v565_v31 = vmul.f32 %v3281_v29, %v3279_v0 }
 0x55e   :  { %v567_v36 = vrot.slane %v565_v31, 4  ;;  %v1126_v37 = vsel %vm1125_vm3, %v1124_v34, %v565_v31  ;;  %v1142_v4 = vrot.slane %v565_v31, 2 }
 0x560   :  { %568 = vrot.lane.b32.xlu1 %v567_v36, %s3463_s3 }
 0x5d2   :  { %v569_v38 = vpop.permute.xlu1 %568 }
 0x5d3   :  { %2798 = vmatmul.mubr.msk.f32.vlgmr.msra.gmra.mrb[8].mxu1 %vm242_vm1, %v569_v38 }
 0x5d4   :  { %2996 = vmatpush1.bf16.msra.mxu1 %v3559_v11  ;;  %863 = vmatprep.mubr.f32.mxu1 %v3462_v6 }
 0x5d5   :  { %2998 = vmatprep.subr.bf16.mxu1 %v3569_v14 }
 0x5d8   :  { %3000 = vmatpush1.bf16.msra.mxu1 %v3589_v20 }
 0x5d9   :  { %3002 = vmatprep.subr.bf16.mxu1 %v3593_v21 }
 0x5dc   :  { %3004 = vmatpush1.bf16.msra.mxu1 %v3613_v26 }
 0x5dd   :  { %3006 = vmatprep.subr.bf16.mxu1 %v3617_v27 }
 0x5e0   :  { %3008 = vmatpush1.bf16.msra.mxu1 %v3628_v30 }
 0x5e1   :  { %3026 = vmatprep.subr.bf16.mxu1 %v3557_v10 }
 0x6a6   :  { %v638_v39 = vpop.f32.mrb[8].mxu1 }
 0x6a7   :  { %v645_v40 = vrot.slane %v638_v39, 2  ;;  %v640_v41 = vpop.f32.mrb[9].mxu1 }
 0x6a8   :  { %v646_v44 = vrot.slane %v640_v41, 2 }
 0x6a9   :  { %v649_v42 = vadd.f32 %v645_v40, %v3661_v59 }
 0x6aa   :  { %v650_v45 = vadd.f32 %v646_v44, %v3669_v63 }
 0x6ab   :  { %v2799_v43 = vmul.f32 -1.442695, %v649_v42 }
 0x6ac   :  { %v2800_v10 = vmul.f32 -1.442695, %v650_v45 }
 0x6ad   :  { %3282 = vpow2.f32 %v2799_v43 }
 0x6ae   :  { %3284 = vtanh.f32 %v650_v45 }
 0x6b7   :  { %v3283_v46 = vpop.eup %3282 }
 0x6b8   :  { %v657_v47 = vadd.f32 1.0, %v3283_v46  ;;  %v3285_v48 = vpop.eup %3284 }
 0x6ba   :  { %3286 = vrcp.f32 %v657_v47 }
 0x6bb   :  { %3288 = vpow2.f32 %v2800_v10 }
 0x6c4   :  { %v3287_v50 = vpop.eup %3286 }
 0x6c5   :  { %v668_v51 = vmul.f32 %v3287_v50, %v3285_v48  ;;  %v667_v52 = vmul.f32 %v3287_v50, %v665_v49  ;;  %v3289_v53 = vpop.eup %3288 }
 0x6c6   :  { %v658_v59 = vadd.f32 1.0, %v3289_v53 }
 0x6c7   :  { %670 = vrot.lane.b32.xlu0 %v668_v51, %s3463_s3 }
 0x6c8   :  { %3290 = vrcp.f32 %v658_v59 }
 0x6d2   :  { %v3291_v63 = vpop.eup %3290 }
 0x739   :  { %v671_v54 = vpop.permute.xlu0 %670 }
 0x73a   :  { %v673_v56 = vadd.f32 %v671_v54, %v667_v52 }
 0x73c   :  { %3292 = vtanh.f32 %v673_v56  ;;  %v777_v23 = vrot.slane %v673_v56, 6 }
 0x746   :  { %v3293_v57 = vpop.eup %3292 }
 0x747   :  { %v675_v2 = vmul.f32 %v3293_v57, %v3291_v63 }
 0x749   :  { %v685_v3 = vrot.slane %v675_v2, 6  ;;  %v3731_v5 = vsel %vm1127_vm4, %v1126_v37, %v675_v2 }
 0x74b   :  { %686 = vrot.lane.b32.xlu1 %v685_v3, %s3463_s3  ;;  %v1151_v8 = vsel %vm1123_vm2, %v685_v3, %v1142_v4 }
 0x74c   :  { %v3737_v9 = vsel %vm1125_vm3, %v1151_v8, %v1144_v7 }
 0x7bd   :  { %v687_v12 = vpop.permute.xlu1 %686 }
 0x7be   :  { %2801 = vmatmul.mubr.msk.f32.vlgmr.msra.gmra.mrb[6].mxu0 %vm242_vm1, %v687_v12 }
 0x7bf   :  { %3012 = vmatpush1.bf16.msra.mxu0 %v3559_v11  ;;  %973 = vmatprep.mubr.f32.mxu0 %v3462_v6 }
 0x7c0   :  { %3014 = vmatprep.subr.bf16.mxu0 %v3569_v14 }
 0x7c3   :  { %3016 = vmatpush1.bf16.msra.mxu0 %v3589_v20 }
 0x7c4   :  { %3018 = vmatprep.subr.bf16.mxu0 %v3593_v21 }
 0x7c7   :  { %3020 = vmatpush1.bf16.msra.mxu0 %v3613_v26 }
 0x7c8   :  { %3022 = vmatprep.subr.bf16.mxu0 %v3617_v27 }
 0x7cb   :  { %3024 = vmatpush1.bf16.msra.mxu0 %v3628_v30 }
 0x891   :  { %v756_v55 = vpop.f32.mrb[6].mxu0 }
 0x892   :  { %v761_v13 = vadd.f32 %v756_v55, %v3665_v61  ;;  %v758_v15 = vpop.f32.mrb[7].mxu0 }
 0x893   :  { %v762_v17 = vadd.f32 %v758_v15, %v3673_v1 }
 0x894   :  { %v2802_v16 = vmul.f32 -1.442695, %v761_v13 }
 0x895   :  { %v2803_v0 = vmul.f32 -1.442695, %v762_v17 }
 0x896   :  { %3294 = vpow2.f32 %v2802_v16 }
 0x897   :  { %3296 = vtanh.f32 %v762_v17 }
 0x8a0   :  { %v3295_v18 = vpop.eup %3294 }
 0x8a1   :  { %v769_v19 = vadd.f32 1.0, %v3295_v18  ;;  %v3297_v22 = vpop.eup %3296 }
 0x8a3   :  { %3298 = vrcp.f32 %v769_v19 }
 0x8a4   :  { %3300 = vpow2.f32 %v2803_v0 }
 0x8ad   :  { %v3299_v60 = vpop.eup %3298 }
 0x8ae   :  { %v780_v24 = vmul.f32 %v3299_v60, %v3297_v22  ;;  %v779_v25 = vmul.f32 %v3299_v60, %v777_v23  ;;  %v3301_v29 = vpop.eup %3300 }
 0x8af   :  { %v770_v31 = vadd.f32 1.0, %v3301_v29 }
 0x8b0   :  { %782 = vrot.lane.b32.xlu0 %v780_v24, %s3463_s3 }
 0x8b1   :  { %3302 = vrcp.f32 %v770_v31 }
 0x8bb   :  { %v3303_v37 = vpop.eup %3302 }
 0x922   :  { %v783_v34 = vpop.permute.xlu0 %782 }
 0x923   :  { %v785_v36 = vadd.f32 %v783_v34, %v779_v25 }
 0x925   :  { %3304 = vtanh.f32 %v785_v36 }
 0x92f   :  { %v3305_v38 = vpop.eup %3304 }
 0x930   :  { %v3751_v39 = vmul.f32 %v3305_v38, %v3303_v37 }
 0x932   :  { %795 = vrot.lane.b32.xlu1 %v3751_v39, %s3463_s3 }
 0x9a4   :  { %v796_v40 = vpop.permute.xlu1 %795 }
 0x9a5   :  { %2804 = vmatmul.mubr.msk.f32.vlgmr.msra.gmra.mrb[10].mxu1 %vm242_vm1, %v796_v40 }
 0x9a6   :  { %3028 = vmatpush1.bf16.msra.mxu1 %v3559_v11  ;;  %1083 = vmatprep.mubr.f32.mxu1 %v3462_v6 }
 0x9a7   :  { %3030 = vmatprep.subr.bf16.mxu1 %v3569_v14 }
 0x9aa   :  { %3032 = vmatpush1.bf16.msra.mxu1 %v3589_v20 }
 0x9ab   :  { %3034 = vmatprep.subr.bf16.mxu1 %v3593_v21 }
 0x9ae   :  { %3036 = vmatpush1.bf16.msra.mxu1 %v3613_v26  ;;  %v892_v26 = vrot.slane %v785_v36, 6 }
 0x9af   :  { %3038 = vmatprep.subr.bf16.mxu1 %v3617_v27 }
 0x9b2   :  { %3040 = vmatpush1.bf16.msra.mxu1 %v3628_v30 }
 0xa78   :  { %v865_v41 = vpop.f32.mrb[10].mxu1 }
 0xa79   :  { %v872_v42 = vrot.slane %v865_v41, 6  ;;  %v867_v43 = vpop.f32.mrb[11].mxu1 }
 0xa7a   :  { %v873_v45 = vrot.slane %v867_v43, 6 }
 0xa7b   :  { %v876_v44 = vadd.f32 %v872_v42, %v3659_v58 }
 0xa7c   :  { %v877_v14 = vadd.f32 %v873_v45, %v3667_v62 }
 0xa7d   :  { %v2805_v11 = vmul.f32 -1.442695, %v876_v44 }
 0xa7e   :  { %v2806_v30 = vmul.f32 -1.442695, %v877_v14 }
 0xa7f   :  { %3306 = vpow2.f32 %v2805_v11 }
 0xa80   :  { %3308 = vtanh.f32 %v877_v14 }
 0xa89   :  { %v3307_v46 = vpop.eup %3306 }
 0xa8a   :  { %v884_v20 = vadd.f32 1.0, %v3307_v46  ;;  %v3309_v21 = vpop.eup %3308 }
 0xa8c   :  { %3310 = vrcp.f32 %v884_v20 }
 0xa8d   :  { %3312 = vpow2.f32 %v2806_v30  ;;  %v1181_v30 = vld [vmem:[%s4218_s6 + $0x58] sm:$0xff] }
 0xa96   :  { %v3311_v47 = vpop.eup %3310 }
 0xa97   :  { %v895_v27 = vmul.f32 %v3311_v47, %v3309_v21  ;;  %v894_v48 = vmul.f32 %v3311_v47, %v892_v26  ;;  %v3313_v49 = vpop.eup %3312  ;;  %v1146_v26 = vrot.slane %v3678_v28, 2  ;;  %v1165_v47 = vld [vmem:[%s4217_s5 + $0x58] sm:$0xff]  ;;  %v1164_v28 = vld [vmem:[%s4217_s5 + $0x50] sm:$0xff] }
 0xa98   :  { %v885_v50 = vadd.f32 1.0, %v3313_v49 }
 0xa99   :  { %897 = vrot.lane.b32.xlu0 %v895_v27, %s3463_s3  ;;  %v1162_v27 = vld [vmem:[%s4217_s5 + $0x40] sm:$0xff] }
 0xa9a   :  { %3314 = vrcp.f32 %v885_v50  ;;  %v3043_v49 = vpack.c.bf16 %v1164_v28, %v1162_v27  ;;  %v1534_v28 = vld [vmem:[%s4220_s8 + $0x18] sm:$0xff] }
 0xaa4   :  { %v3315_v10 = vpop.eup %3314 }
 0xb0b   :  { %v898_v51 = vpop.permute.xlu0 %897 }
 0xb0c   :  { %v900_v52 = vadd.f32 %v898_v51, %v894_v48  ;;  %v1178_v51 = vld [vmem:[%s4218_s6 + $0x40] sm:$0xff] }
 0xb0e   :  { %3316 = vtanh.f32 %v900_v52  ;;  %v1002_v15 = vrot.slane %v900_v52, 6  ;;  %v1180_v52 = vld [vmem:[%s4218_s6 + $0x50] sm:$0xff] }
 0xb18   :  { %v3317_v53 = vpop.eup %3316 }
 0xb19   :  { %v3767_v59 = vmul.f32 %v3317_v53, %v3315_v10  ;;  %v1167_v10 = vld [vmem:[%s4217_s5 + $0x68] sm:$0xff]  ;;  %v3059_v53 = vpack.c.bf16 %v1180_v52, %v1178_v51 }
 0xb1b   :  { %v904_v54 = vrot.slane %v3767_v59, 2  ;;  %v1129_v0 = vsel %vm1123_vm2, %v3751_v39, %v3767_v59 }
 0xb1d   :  { %905 = vrot.lane.b32.xlu1 %v904_v54, %s3463_s3  ;;  %v1169_v54 = vld [vmem:[%s4217_s5 + $0x78] sm:$0xff] }
 0xb8f   :  { %v906_v56 = vpop.permute.xlu1 %905 }
 0xb90   :  { %2807 = vmatmul.mubr.msk.f32.vlgmr.msra.gmra.mrb[8].mxu0 %vm242_vm1, %v906_v56  ;;  %v3045_v56 = vpack.c.bf16 %v1169_v54, %v1167_v10  ;;  %v1536_v10 = vld [vmem:[%s4220_s8 + $0x28] sm:$0xff] }
 0xb91   :  { %1261 = vmatprep.mubr.f32.mxu0 %v3462_v6 }
 0xc63   :  { %v975_v63 = vpop.f32.mrb[8].mxu0 }
 0xc64   :  { %v982_v57 = vrot.slane %v975_v63, 4  ;;  %v977_v2 = vpop.f32.mrb[9].mxu0 }
 0xc65   :  { %v983_v7 = vrot.slane %v977_v2, 4 }
 0xc66   :  { %v986_v3 = vadd.f32 %v982_v57, %v3665_v61 }
 0xc67   :  { %v987_v8 = vadd.f32 %v983_v7, %v3673_v1  ;;  %v1166_v7 = vld [vmem:[%s4217_s5 + $0x60] sm:$0xff] }
 0xc68   :  { %v2808_v4 = vmul.f32 -1.442695, %v986_v3 }
 0xc69   :  { %v2809_v19 = vmul.f32 -1.442695, %v987_v8 }
 0xc6a   :  { %3318 = vpow2.f32 %v2808_v4 }
 0xc6b   :  { %3320 = vtanh.f32 %v987_v8  ;;  %v1168_v8 = vld [vmem:[%s4217_s5 + $0x70] sm:$0xff] }
 0xc74   :  { %v3319_v12 = vpop.eup %3318 }
 0xc75   :  { %v994_v55 = vadd.f32 1.0, %v3319_v12  ;;  %v3321_v13 = vpop.eup %3320  ;;  %v1183_v12 = vld [vmem:[%s4218_s6 + $0x68] sm:$0xff] }
 0xc77   :  { %3322 = vrcp.f32 %v994_v55  ;;  %v3047_v55 = vpack.c.bf16 %v1168_v8, %v1166_v7 }
 0xc78   :  { %3324 = vpow2.f32 %v2809_v19  ;;  %v1155_v19 = vld [vmem:[%s4217_s5 + $0x8] sm:$0xff] }
 0xc81   :  { %v3323_v16 = vpop.eup %3322 }
 0xc82   :  { %v1005_v17 = vmul.f32 %v3323_v16, %v3321_v13  ;;  %v1004_v18 = vmul.f32 %v3323_v16, %v1002_v15  ;;  %v3325_v22 = vpop.eup %3324  ;;  %v1185_v13 = vld [vmem:[%s4218_s6 + $0x78] sm:$0xff]  ;;  %v1182_v15 = vld [vmem:[%s4218_s6 + $0x60] sm:$0xff]  ;;  %v1184_v16 = vld [vmem:[%s4218_s6 + $0x70] sm:$0xff] }
 0xc83   :  { %v995_v61 = vadd.f32 1.0, %v3325_v22  ;;  %v1157_v22 = vld [vmem:[%s4217_s5 + $0x18] sm:$0xff] }
 0xc84   :  { %1007 = vrot.lane.b32.xlu0 %v1005_v17, %s3463_s3  ;;  %v3061_v17 = vpack.c.bf16 %v1185_v13, %v1183_v12  ;;  %v1539_v12 = vld [vmem:[%s4220_s8 + $0x40] sm:$0xff] }
 0xc85   :  { %3326 = vrcp.f32 %v995_v61  ;;  %v3049_v61 = vpack.c.bf16 %v1157_v22, %v1155_v19  ;;  %v1543_v19 = vld [vmem:[%s4220_s8 + $0x60] sm:$0xff]  ;;  %v1545_v22 = vld [vmem:[%s4220_s8 + $0x70] sm:$0xff] }
 0xc8f   :  { %v3327_v1 = vpop.eup %3326 }
 0xcf6   :  { %v1008_v23 = vpop.permute.xlu0 %1007 }
 0xcf7   :  { %v1010_v60 = vadd.f32 %v1008_v23, %v1004_v18  ;;  %v3063_v18 = vpack.c.bf16 %v1184_v16, %v1182_v15  ;;  %v1171_v23 = vld [vmem:[%s4218_s6 + $0x8] sm:$0xff]  ;;  %v1546_v16 = vld [vmem:[%s4220_s8 + $0x78] sm:$0xff] }
 0xcf8   :  { %v1544_v15 = vld [vmem:[%s4220_s8 + $0x68] sm:$0xff] }
 0xcf9   :  { %3328 = vtanh.f32 %v1010_v60  ;;  %v1112_v14 = vrot.slane %v1010_v60, 6  ;;  %v1173_v60 = vld [vmem:[%s4218_s6 + $0x18] sm:$0xff] }
 0xd03   :  { %v3329_v24 = vpop.eup %3328 }
 0xd04   :  { %v3776_v25 = vmul.f32 %v3329_v24, %v3327_v1  ;;  %v3065_v1 = vpack.c.bf16 %v1173_v60, %v1171_v23  ;;  %v1361_v23 = vld [vmem:[%s4219_s7] sm:$0x3] }
 0xd06   :  { %v1014_v29 = vrot.slane %v3776_v25, 4  ;;  %v3784_v31 = vsel %vm1125_vm3, %v1129_v0, %v3776_v25 }
 0xd08   :  { %1015 = vrot.lane.b32.xlu1 %v1014_v29, %s3463_s3 }
 0xd7a   :  { %v1016_v34 = vpop.permute.xlu1 %1015 }
 0xd7b   :  { %2810 = vmatmul.mubr.msk.f32.vlgmr.msra.gmra.mrb[12].mxu1 %vm242_vm1, %v1016_v34 }
 0xd7c   :  { %1441 = vmatprep.mubr.f32.mxu1 %v3462_v6 }
 0xe4e   :  { %v1085_v36 = vpop.f32.mrb[12].mxu1 }
 0xe4f   :  { %v1092_v37 = vrot.slane %v1085_v36, 2  ;;  %v1087_v38 = vpop.f32.mrb[13].mxu1 }
 0xe50   :  { %v1093_v42 = vrot.slane %v1087_v38, 2  ;;  %v1137_v38 = vrot.slane %v3767_v59, 6  ;;  %v1170_v59 = vld [vmem:[%s4218_s6] sm:$0xff] }
 0xe51   :  { %v1096_v40 = vadd.f32 %v1092_v37, %v3659_v58  ;;  %v1153_v58 = vsel %vm1127_vm4, %v3737_v9, %v1146_v26  ;;  %v1179_v9 = vld [vmem:[%s4218_s6 + $0x48] sm:$0xff]  ;;  %v1135_v37 = vrot.slane %v3776_v25, 2  ;;  %v1154_v25 = vld [vmem:[%s4217_s5] sm:$0xff]  ;;  %v1160_v26 = vld [vmem:[%s4217_s5 + $0x30] sm:$0xff] }
 0xe52   :  { %v1097_v43 = vadd.f32 %v1093_v42, %v3667_v62  ;;  %v1163_v62 = vld [vmem:[%s4217_s5 + $0x48] sm:$0xff]  ;;  %v3057_v50 = vpack.c.bf16 %v1181_v30, %v1179_v9 }
 0xe53   :  { %v2811_v41 = vmul.f32 -1.442695, %v1096_v40  ;;  %v3041_v48 = vpack.c.bf16 %v1165_v47, %v1163_v62  ;;  %v1139_v40 = vrot.slane %v3751_v39, 2  ;;  %v1156_v39 = vld [vmem:[%s4217_s5 + $0x10] sm:$0xff] }
 0xe54   :  { %3058 = vmatprep.subr.bf16.mxu1 %v3057_v50  ;;  %v2812_v63 = vmul.f32 -1.442695, %v1097_v43  ;;  %v1176_v62 = vld [vmem:[%s4218_s6 + $0x30] sm:$0xff] }
 0xe55   :  { %3330 = vpow2.f32 %v2811_v41  ;;  %3042 = vmatprep.subr.bf16.mxu0 %v3041_v48  ;;  %3060 = vmatpush1.bf16.msra.mxu1 %v3059_v53  ;;  %v1532_v48 = vld [vmem:[%s4220_s8 + $0x8] sm:$0xff]  ;;  %v1533_v50 = vld [vmem:[%s4220_s8 + $0x10] sm:$0xff]  ;;  %v1538_v53 = vld [vmem:[%s4220_s8 + $0x38] sm:$0xff] }
 0xe56   :  { %3332 = vtanh.f32 %v1097_v43  ;;  %3044 = vmatpush1.bf16.msra.mxu0 %v3043_v49  ;;  %3062 = vmatprep.subr.bf16.mxu1 %v3061_v17  ;;  %v1531_v49 = vld [vmem:[%s4220_s8] sm:$0xff]  ;;  %v3926_v52 = vpack.c.bf16 %v1534_v28, %v1532_v48 }
 0xe57   :  { %3046 = vmatprep.subr.bf16.mxu0 %v3045_v56  ;;  %v3936_v54 = vpack.c.bf16 %v1533_v50, %v1531_v49  ;;  %v3940_v56 = vpack.c.bf16 %v1538_v53, %v1536_v10 }
 0xe59   :  { %3064 = vmatpush1.bf16.msra.mxu1 %v3063_v18  ;;  %v3986_v18 = vpack.c.bf16 %v1546_v16, %v1544_v15 }
 0xe5a   :  { %3048 = vmatpush1.bf16.msra.mxu0 %v3047_v55  ;;  %3066 = vmatprep.subr.bf16.mxu1 %v3065_v1  ;;  %v1541_v55 = vld [vmem:[%s4220_s8 + $0x50] sm:$0xff]  ;;  %v1366_v1 = vrot.slane %v1361_v23, %v47_v33 }
 0xe5b   :  { %3050 = vmatprep.subr.bf16.mxu0 %v3049_v61  ;;  %v3982_v17 = vpack.c.bf16 %v1541_v55, %v1539_v12  ;;  %v3999_v61 = vpack.c.bf16 %v1545_v22, %v1543_v19 }
 0xe5f   :  { %v3331_v44 = vpop.eup %3330 }
 0xe60   :  { %v1104_v11 = vadd.f32 1.0, %v3331_v44  ;;  %v3333_v45 = vpop.eup %3332  ;;  %v1161_v44 = vld [vmem:[%s4217_s5 + $0x38] sm:$0xff] }
 0xe62   :  { %3334 = vrcp.f32 %v1104_v11  ;;  %v1175_v11 = vld [vmem:[%s4218_s6 + $0x28] sm:$0xff] }
 0xe63   :  { %3336 = vpow2.f32 %v2812_v63  ;;  %v1535_v63 = vld [vmem:[%s4220_s8 + $0x20] sm:$0xff] }
 0xe6c   :  { %v3335_v46 = vpop.eup %3334 }
 0xe6d   :  { %v1115_v20 = vmul.f32 %v3335_v46, %v3333_v45  ;;  %v1114_v21 = vmul.f32 %v3335_v46, %v1112_v14  ;;  %v3337_v57 = vpop.eup %3336  ;;  %v1177_v45 = vld [vmem:[%s4218_s6 + $0x38] sm:$0xff]  ;;  %v3051_v14 = vpack.c.bf16 %v1156_v39, %v1154_v25 }
 0xe6e   :  { %v1105_v2 = vadd.f32 1.0, %v3337_v57  ;;  %v3069_v27 = vpack.c.bf16 %v1177_v45, %v1175_v11  ;;  %v1537_v57 = vld [vmem:[%s4220_s8 + $0x30] sm:$0xff] }
 0xe6f   :  { %1117 = vrot.lane.b32.xlu0 %v1115_v20, %s3463_s3  ;;  %v1158_v20 = vld [vmem:[%s4217_s5 + $0x20] sm:$0xff]  ;;  %v3960_v7 = vpack.c.bf16 %v1537_v57, %v1535_v63 }
 0xe70   :  { %3338 = vrcp.f32 %v1105_v2  ;;  %v3055_v9 = vpack.c.bf16 %v1160_v26, %v1158_v20 }
 0xe73   :  { %1190 = vrot.lane.b32.xlu0 %v1153_v58, %s3464_s19  ;;  %v1174_v58 = vld [vmem:[%s4218_s6 + $0x20] sm:$0xff] }
 0xe74   :  { %v3071_v30 = vpack.c.bf16 %v1176_v62, %v1174_v58 }
 0xe7a   :  { %v3339_v24 = vpop.eup %3338 }
 0xee1   :  { %v1118_v3 = vpop.permute.xlu0 %1117 }
 0xee2   :  { %v1120_v4 = vadd.f32 %v1118_v3, %v1114_v21  ;;  %v1540_v3 = vld [vmem:[%s4220_s8 + $0x48] sm:$0xff] }
 0xee4   :  { %3340 = vtanh.f32 %v1120_v4  ;;  %v1542_v4 = vld [vmem:[%s4220_s8 + $0x58] sm:$0xff] }
 0xee5   :  { %v1191_v51 = vpop.permute.xlu0 %1190  ;;  %v3964_v8 = vpack.c.bf16 %v1542_v4, %v1540_v3 }
 0xeee   :  { %v3341_v0 = vpop.eup %3340 }
 0xeef   :  { %v3856_v29 = vmul.f32 %v3341_v0, %v3339_v24  ;;  %v1370_v0 = vrot.slane %v1361_v23, %v51_v35 }
 0xef1   :  { %v1131_v34 = vsel %vm1127_vm4, %v3784_v31, %v3856_v29  ;;  %v1133_v36 = vrot.slane %v3856_v29, 6  ;;  %v1172_v31 = vld [vmem:[%s4218_s6 + $0x10] sm:$0xff] }
 0xef2   :  { %1278 = vrot.lane.b32.xlu0 %v1131_v34, %s3463_s3  ;;  %v3067_v46 = vpack.c.bf16 %v1172_v31, %v1170_v59 }
 0xef3   :  { %v1148_v41 = vsel %vm1123_vm2, %v1133_v36, %v1135_v37 }
 0xef4   :  { %v1149_v42 = vsel %vm1125_vm3, %v1148_v41, %v1137_v38 }
 0xef5   :  { %v1150_v43 = vsel %vm1127_vm4, %v1149_v42, %v1139_v40 }
 0xef6   :  { %1188 = vrot.lane.b32.xlu1 %v1150_v43, %s3464_s19 }
 0xefa   :  { %1276 = vrot.lane.b32.xlu1 %v3731_v5, %s3463_s3  ;;  %v1159_v5 = vld [vmem:[%s4217_s5 + $0x28] sm:$0xff] }
 0xefb   :  { %v3053_v21 = vpack.c.bf16 %v1161_v44, %v1159_v5 }
 0xf64   :  { %v1279_v13 = vpop.permute.xlu0 %1278 }
 0xf68   :  { %v1189_v47 = vpop.permute.xlu1 %1188 }
 0xf69   :  { %2813 = vmatmul.mubr.msk.f32.vlgmr.msra.gmra.mrb[10].mxu0 %vm1192_vm5, %v1189_v47  ;;  %2817 = vmatmul.mubr.msk.f32.vlgmr.msra.gmra.mrb[14].mxu1 %vm1192_vm5, %v1189_v47 }
 0xf6a   :  { %3052 = vmatpush1.bf16.msra.mxu0 %v3051_v14  ;;  %3068 = vmatpush1.bf16.msra.mxu1 %v3067_v46 }
 0xf6b   :  { %1267 = vmatprep.mubr.f32.mxu0 %v3462_v6  ;;  %3054 = vmatprep.subr.bf16.mxu0 %v3053_v21 }
 0xf6c   :  { %1447 = vmatprep.mubr.f32.mxu1 %v3462_v6  ;;  %3070 = vmatprep.subr.bf16.mxu1 %v3069_v27  ;;  %v1277_v2 = vpop.permute.xlu1 %1276 }
 0xf6d   :  { %2814 = vmatmul.mubr.msk.f32.gmra.mrb[12].mxu0 %vm1192_vm5, %v1191_v51  ;;  %2818 = vmatmul.mubr.msk.f32.gmra.mrb[16].mxu1 %vm1192_vm5, %v1191_v51 }
 0xf6e   :  { %3056 = vmatpush1.bf16.msra.mxu0 %v3055_v9  ;;  %3072 = vmatpush1.bf16.msra.mxu1 %v3071_v30 }
 0xf6f   :  { %1348 = vmatprep.mubr.f32.mxu0 %v3462_v6  ;;  %1518 = vmatprep.mubr.f32.mxu1 %v3462_v6 }
 0xf70   :  { %3074 = vmatprep.subr.bf16.mxu0 %v3926_v52  ;;  %3090 = vmatprep.subr.bf16.mxu1 %v3926_v52 }
 0xf71   :  { %2815 = vmatmul.mubr.msk.f32.vlgmr.msra.gmra.mrb[10].mxu0 %vm1192_vm5, %v1277_v2  ;;  %2819 = vmatmul.mubr.msk.f32.vlgmr.msra.gmra.mrb[14].mxu1 %vm1192_vm5, %v1277_v2 }
 0xf72   :  { %3076 = vmatpush1.bf16.msra.mxu0 %v3936_v54  ;;  %1354 = vmatprep.mubr.f32.mxu0 %v3462_v6 }
 0xf73   :  { %1524 = vmatprep.mubr.f32.mxu1 %v3462_v6  ;;  %3078 = vmatprep.subr.bf16.mxu0 %v3940_v56 }
 0xf74   :  { %3092 = vmatpush1.bf16.msra.mxu1 %v3936_v54 }
 0xf75   :  { %2816 = vmatmul.mubr.msk.f32.gmra.mrb[12].mxu0 %vm1192_vm5, %v1279_v13  ;;  %2820 = vmatmul.mubr.msk.f32.gmra.mrb[16].mxu1 %vm1192_vm5, %v1279_v13 }
 0xf76   :  { %3080 = vmatpush1.bf16.msra.mxu0 %v3960_v7  ;;  %1619 = vmatprep.mubr.f32.mxu0 %v3462_v6 }
 0xf77   :  { %3082 = vmatprep.subr.bf16.mxu0 %v3964_v8  ;;  %3094 = vmatprep.subr.bf16.mxu1 %v3940_v56 }
 0xf78   :  { %3096 = vmatpush1.bf16.msra.mxu1 %v3960_v7  ;;  %1725 = vmatprep.mubr.f32.mxu1 %v3462_v6 }
 0xf79   :  { %3098 = vmatprep.subr.bf16.mxu1 %v3964_v8 }
 0xf7a   :  { %3084 = vmatpush1.bf16.msra.mxu0 %v3982_v17 }
 0xf7b   :  { %3086 = vmatprep.subr.bf16.mxu0 %v3986_v18 }
 0xf7c   :  { %3100 = vmatpush1.bf16.msra.mxu1 %v3982_v17 }
 0xf7d   :  { %3102 = vmatprep.subr.bf16.mxu1 %v3986_v18 }
 0xf7e   :  { %3088 = vmatpush1.bf16.msra.mxu0 %v3999_v61 }
 0xf7f   :  { %3106 = vmatprep.subr.bf16.mxu0 %v3926_v52 }
 0xf80   :  { %3104 = vmatpush1.bf16.msra.mxu1 %v3999_v61 }
 0xf81   :  { %1620 = vmatmul.mubr.f32.vlgmr.msra.gmra.mrb[14].mxu0 %v3462_v6  ;;  %3122 = vmatprep.subr.bf16.mxu1 %v3926_v52 }
 0xf82   :  { %3108 = vmatpush1.bf16.msra.mxu0 %v3936_v54  ;;  %1835 = vmatprep.mubr.f32.mxu0 %v3462_v6 }
 0xf83   :  { %3110 = vmatprep.subr.bf16.mxu0 %v3940_v56 }
 0xf86   :  { %3112 = vmatpush1.bf16.msra.mxu0 %v3960_v7 }
 0xf87   :  { %3114 = vmatprep.subr.bf16.mxu0 %v3964_v8 }
 0xf8a   :  { %3116 = vmatpush1.bf16.msra.mxu0 %v3982_v17 }
 0xf8b   :  { %3118 = vmatprep.subr.bf16.mxu0 %v3986_v18 }
 0xf8e   :  { %3120 = vmatpush1.bf16.msra.mxu0 %v3999_v61 }
 0xf8f   :  { %3138 = vmatprep.subr.bf16.mxu0 %v3926_v52 }
0x1044   :  { %v1350_v60 = vpop.f32.mrb[10].mxu0  ;;  %v1520_v24 = vpop.f32.mrb[14].mxu1 }
0x1045   :  { %v1352_v34 = vpop.f32.mrb[11].mxu0  ;;  %v1522_v37 = vpop.f32.mrb[15].mxu1  ;;  %v1373_v38 = vadd.f32 %v1366_v1, %v1350_v60  ;;  %v1987_v40 = vrot.slane %v1520_v24, 6  ;;  %v2097_v41 = vrot.slane %v1520_v24, 2 }
0x1046   :  { %v1374_v42 = vadd.f32 %v1370_v0, %v1352_v34  ;;  %v1988_v39 = vrot.slane %v1522_v37, 6  ;;  %v2098_v45 = vrot.slane %v1522_v37, 2 }
0x1048   :  { %v1356_v43 = vpop.f32.mrb[12].mxu0  ;;  %v1526_v25 = vpop.f32.mrb[16].mxu1 }
0x1049   :  { %v1375_v59 = vadd.f32 %v1366_v1, %v1356_v43  ;;  %v1549_v31 = vrot.slane %v1526_v25, 6  ;;  %v1650_v5 = vrot.slane %v1526_v25, 2  ;;  %v1358_v44 = vpop.f32.mrb[13].mxu0  ;;  %v1528_v11 = vpop.f32.mrb[17].mxu1 }
0x104a   :  { %v1376_v33 = vadd.f32 %v1370_v0, %v1358_v44  ;;  %v1550_v14 = vrot.slane %v1528_v11, 6  ;;  %v1651_v46 = vrot.slane %v1528_v11, 2 }
0x104b   :  { %v4025_v32 = vadd.f32 %v2097_v41, %v1375_v59  ;;  %v4027_v35 = vadd.f32 %v1650_v5, %v1373_v38  ;;  %v4029_v20 = vadd.f32 %v1549_v31, %v1373_v38  ;;  %v4031_v21 = vadd.f32 %v1987_v40, %v1375_v59 }
0x104c   :  { %v4033_v26 = vadd.f32 %v2098_v45, %v1376_v33  ;;  %v4035_v58 = vadd.f32 %v1651_v46, %v1374_v42  ;;  %v4037_v62 = vadd.f32 %v1550_v14, %v1374_v42  ;;  %v4039_v47 = vadd.f32 %v1988_v39, %v1376_v33 }
0x1054   :  { %v1621_v27 = vpop.f32.mrb[14].mxu0 }
0x1055   :  { %v1626_v48 = vadd.f32 %v1621_v27, %v4029_v20  ;;  %v1623_v28 = vpop.f32.mrb[15].mxu0 }
0x1056   :  { %v1627_v30 = vadd.f32 %v1623_v28, %v4037_v62 }
0x1057   :  { %v2821_v9 = vmul.f32 -1.442695, %v1626_v48 }
0x1058   :  { %v2822_v63 = vmul.f32 -1.442695, %v1627_v30 }
0x1059   :  { %3342 = vpow2.f32 %v2821_v9 }
0x105a   :  { %3344 = vtanh.f32 %v1627_v30 }
0x1063   :  { %v3343_v49 = vpop.eup %3342 }
0x1064   :  { %v1634_v50 = vadd.f32 1.0, %v3343_v49  ;;  %v3345_v51 = vpop.eup %3344 }
0x1066   :  { %3346 = vrcp.f32 %v1634_v50 }
0x1067   :  { %3348 = vpow2.f32 %v2822_v63 }
0x1070   :  { %v3347_v10 = vpop.eup %3346 }
0x1071   :  { %v1642_v53 = vmul.f32 %v3347_v10, %v3345_v51  ;;  %v3349_v57 = vpop.eup %3348  ;;  %v1641_v3 = vmul.f32 0.0, %v3347_v10 }
0x1072   :  { %v1635_v2 = vadd.f32 1.0, %v3349_v57 }
0x1073   :  { %1644 = vrot.lane.b32.xlu1 %v1642_v53, %s3463_s3 }
0x1074   :  { %3350 = vrcp.f32 %v1635_v2 }
0x107e   :  { %v3351_v55 = vpop.eup %3350 }
0x10e5   :  { %v1645_v4 = vpop.permute.xlu1 %1644 }
0x10e6   :  { %v1647_v12 = vadd.f32 %v1645_v4, %v1641_v3 }
0x10e8   :  { %3352 = vtanh.f32 %v1647_v12  ;;  %v1754_v40 = vrot.slane %v1647_v12, 6 }
0x10f2   :  { %v3353_v13 = vpop.eup %3352 }
0x10f3   :  { %v1649_v15 = vmul.f32 %v3353_v13, %v3351_v55 }
0x10f5   :  { %1657 = vrot.lane.b32.xlu0 %v1649_v15, %s3463_s3 }
0x1167   :  { %v1658_v16 = vpop.permute.xlu0 %1657 }
0x1168   :  { %2823 = vmatmul.mubr.msk.f32.vlgmr.msra.gmra.mrb[18].mxu1 %vm242_vm1, %v1658_v16 }
0x1169   :  { %3124 = vmatpush1.bf16.msra.mxu1 %v3936_v54  ;;  %1945 = vmatprep.mubr.f32.mxu1 %v3462_v6 }
0x116a   :  { %3126 = vmatprep.subr.bf16.mxu1 %v3940_v56 }
0x116d   :  { %3128 = vmatpush1.bf16.msra.mxu1 %v3960_v7 }
0x116e   :  { %3130 = vmatprep.subr.bf16.mxu1 %v3964_v8 }
0x1171   :  { %3132 = vmatpush1.bf16.msra.mxu1 %v3982_v17 }
0x1172   :  { %3134 = vmatprep.subr.bf16.mxu1 %v3986_v18 }
0x1175   :  { %3136 = vmatpush1.bf16.msra.mxu1 %v3999_v61 }
0x1176   :  { %3154 = vmatprep.subr.bf16.mxu1 %v3926_v52 }
0x123b   :  { %v1727_v19 = vpop.f32.mrb[18].mxu1 }
0x123c   :  { %v1734_v22 = vrot.slane %v1727_v19, 6  ;;  %v1729_v23 = vpop.f32.mrb[19].mxu1 }
0x123d   :  { %v1735_v24 = vrot.slane %v1729_v23, 6 }
0x123e   :  { %v1738_v60 = vadd.f32 %v1734_v22, %v4027_v35 }
0x123f   :  { %v1739_v0 = vadd.f32 %v1735_v24, %v4035_v58 }
0x1240   :  { %v2824_v1 = vmul.f32 -1.442695, %v1738_v60 }
0x1241   :  { %v2825_v25 = vmul.f32 -1.442695, %v1739_v0 }
0x1242   :  { %3354 = vpow2.f32 %v2824_v1 }
0x1243   :  { %3356 = vtanh.f32 %v1739_v0 }
0x124c   :  { %v3355_v34 = vpop.eup %3354 }
0x124d   :  { %v1746_v37 = vadd.f32 1.0, %v3355_v34  ;;  %v3357_v38 = vpop.eup %3356 }
0x124f   :  { %3358 = vrcp.f32 %v1746_v37 }
0x1250   :  { %3360 = vpow2.f32 %v2825_v25 }
0x1259   :  { %v3359_v41 = vpop.eup %3358 }
0x125a   :  { %v1757_v42 = vmul.f32 %v3359_v41, %v3357_v38  ;;  %v1756_v43 = vmul.f32 %v3359_v41, %v1754_v40  ;;  %v3361_v39 = vpop.eup %3360 }
0x125b   :  { %v1747_v59 = vadd.f32 1.0, %v3361_v39 }
0x125c   :  { %1759 = vrot.lane.b32.xlu1 %v1757_v42, %s3463_s3 }
0x125d   :  { %3362 = vrcp.f32 %v1747_v59 }
0x1267   :  { %v3363_v44 = vpop.eup %3362 }
0x12ce   :  { %v1760_v31 = vpop.permute.xlu1 %1759 }
0x12cf   :  { %v1762_v5 = vadd.f32 %v1760_v31, %v1756_v43 }
0x12d1   :  { %3364 = vtanh.f32 %v1762_v5  ;;  %v1864_v53 = vrot.slane %v1762_v5, 6 }
0x12db   :  { %v3365_v11 = vpop.eup %3364 }
0x12dc   :  { %v1764_v45 = vmul.f32 %v3365_v11, %v3363_v44 }
0x12de   :  { %v1766_v33 = vrot.slane %v1764_v45, 2 }
0x12e0   :  { %1767 = vrot.lane.b32.xlu0 %v1766_v33, %s3463_s3 }
0x1352   :  { %v1768_v14 = vpop.permute.xlu0 %1767 }
0x1353   :  { %2826 = vmatmul.mubr.msk.f32.vlgmr.msra.gmra.mrb[16].mxu0 %vm242_vm1, %v1768_v14 }
0x1354   :  { %3140 = vmatpush1.bf16.msra.mxu0 %v3936_v54  ;;  %2063 = vmatprep.mubr.f32.mxu0 %v3462_v6 }
0x1355   :  { %3142 = vmatprep.subr.bf16.mxu0 %v3940_v56 }
0x1358   :  { %3144 = vmatpush1.bf16.msra.mxu0 %v3960_v7 }
0x1359   :  { %3146 = vmatprep.subr.bf16.mxu0 %v3964_v8 }
0x135c   :  { %3148 = vmatpush1.bf16.msra.mxu0 %v3982_v17 }
0x135d   :  { %3150 = vmatprep.subr.bf16.mxu0 %v3986_v18 }
0x1360   :  { %3152 = vmatpush1.bf16.msra.mxu0 %v3999_v61 }
0x1361   :  { %3170 = vmatprep.subr.bf16.mxu0 %v3926_v52 }
0x1426   :  { %v1837_v46 = vpop.f32.mrb[16].mxu0 }
0x1427   :  { %v1844_v27 = vrot.slane %v1837_v46, 4  ;;  %v1839_v48 = vpop.f32.mrb[17].mxu0 }
0x1428   :  { %v1845_v30 = vrot.slane %v1839_v48, 4 }
0x1429   :  { %v1848_v28 = vadd.f32 %v1844_v27, %v4029_v20 }
0x142a   :  { %v1849_v49 = vadd.f32 %v1845_v30, %v4037_v62 }
0x142b   :  { %v2827_v9 = vmul.f32 -1.442695, %v1848_v28 }
0x142c   :  { %v2828_v3 = vmul.f32 -1.442695, %v1849_v49 }
0x142d   :  { %3366 = vpow2.f32 %v2827_v9 }
0x142e   :  { %3368 = vtanh.f32 %v1849_v49 }
0x1437   :  { %v3367_v50 = vpop.eup %3366 }
0x1438   :  { %v1856_v51 = vadd.f32 1.0, %v3367_v50  ;;  %v3369_v10 = vpop.eup %3368 }
0x143a   :  { %3370 = vrcp.f32 %v1856_v51 }
0x143b   :  { %3372 = vpow2.f32 %v2828_v3 }
0x1444   :  { %v3371_v63 = vpop.eup %3370 }
0x1445   :  { %v1867_v57 = vmul.f32 %v3371_v63, %v3369_v10  ;;  %v1866_v2 = vmul.f32 %v3371_v63, %v1864_v53  ;;  %v3373_v4 = vpop.eup %3372 }
0x1446   :  { %v1857_v20 = vadd.f32 1.0, %v3373_v4 }
0x1447   :  { %1869 = vrot.lane.b32.xlu1 %v1867_v57, %s3463_s3 }
0x1448   :  { %3374 = vrcp.f32 %v1857_v20 }
0x1452   :  { %v3375_v62 = vpop.eup %3374 }
0x14b9   :  { %v1870_v12 = vpop.permute.xlu1 %1869 }
0x14ba   :  { %v1872_v55 = vadd.f32 %v1870_v12, %v1866_v2 }
0x14bc   :  { %3376 = vtanh.f32 %v1872_v55  ;;  %v1974_v41 = vrot.slane %v1872_v55, 6 }
0x14c6   :  { %v3377_v13 = vpop.eup %3376 }
0x14c7   :  { %v1874_v15 = vmul.f32 %v3377_v13, %v3375_v62 }
0x14c9   :  { %v1876_v16 = vrot.slane %v1874_v15, 4 }
0x14cb   :  { %1877 = vrot.lane.b32.xlu0 %v1876_v16, %s3463_s3 }
0x153d   :  { %v1878_v19 = vpop.permute.xlu0 %1877 }
0x153e   :  { %2829 = vmatmul.mubr.msk.f32.vlgmr.msra.gmra.mrb[20].mxu1 %vm242_vm1, %v1878_v19 }
0x153f   :  { %3156 = vmatpush1.bf16.msra.mxu1 %v3936_v54  ;;  %2172 = vmatprep.mubr.f32.mxu1 %v3462_v6 }
0x1540   :  { %3158 = vmatprep.subr.bf16.mxu1 %v3940_v56 }
0x1543   :  { %3160 = vmatpush1.bf16.msra.mxu1 %v3960_v7 }
0x1544   :  { %3162 = vmatprep.subr.bf16.mxu1 %v3964_v8 }
0x1547   :  { %3164 = vmatpush1.bf16.msra.mxu1 %v3982_v17 }
0x1548   :  { %3166 = vmatprep.subr.bf16.mxu1 %v3986_v18 }
0x154b   :  { %3168 = vmatpush1.bf16.msra.mxu1 %v3999_v61 }
0x154c   :  { %3186 = vmatprep.subr.bf16.mxu1 %v3926_v52 }
0x1611   :  { %v1947_v22 = vpop.f32.mrb[20].mxu1 }
0x1612   :  { %v1954_v23 = vrot.slane %v1947_v22, 2  ;;  %v1949_v60 = vpop.f32.mrb[21].mxu1 }
0x1613   :  { %v1955_v0 = vrot.slane %v1949_v60, 2 }
0x1614   :  { %v1958_v1 = vadd.f32 %v1954_v23, %v4027_v35 }
0x1615   :  { %v1959_v34 = vadd.f32 %v1955_v0, %v4035_v58 }
0x1616   :  { %v2830_v24 = vmul.f32 -1.442695, %v1958_v1 }
0x1617   :  { %v2831_v52 = vmul.f32 -1.442695, %v1959_v34 }
0x1618   :  { %3378 = vpow2.f32 %v2830_v24 }
0x1619   :  { %3380 = vtanh.f32 %v1959_v34 }
0x1622   :  { %v3379_v37 = vpop.eup %3378 }
0x1623   :  { %v1966_v38 = vadd.f32 1.0, %v3379_v37  ;;  %v3381_v40 = vpop.eup %3380 }
0x1625   :  { %3382 = vrcp.f32 %v1966_v38 }
0x1626   :  { %3384 = vpow2.f32 %v2831_v52 }
0x162f   :  { %v3383_v42 = vpop.eup %3382 }
0x1630   :  { %v1977_v43 = vmul.f32 %v3383_v42, %v3381_v40  ;;  %v1976_v25 = vmul.f32 %v3383_v42, %v1974_v41  ;;  %v3385_v39 = vpop.eup %3384 }
0x1631   :  { %v1967_v35 = vadd.f32 1.0, %v3385_v39 }
0x1632   :  { %1979 = vrot.lane.b32.xlu1 %v1977_v43, %s3463_s3 }
0x1633   :  { %3386 = vrcp.f32 %v1967_v35 }
0x163d   :  { %v3387_v58 = vpop.eup %3386 }
0x16a4   :  { %v1980_v59 = vpop.permute.xlu1 %1979 }
0x16a5   :  { %v1982_v31 = vadd.f32 %v1980_v59, %v1976_v25 }
0x16a7   :  { %3388 = vtanh.f32 %v1982_v31  ;;  %v2086_v49 = vrot.slane %v1982_v31, 6 }
0x16b1   :  { %v3389_v5 = vpop.eup %3388 }
0x16b2   :  { %v1984_v44 = vmul.f32 %v3389_v5, %v3387_v58 }
0x16b4   :  { %v1994_v11 = vrot.slane %v1984_v44, 6 }
0x16b6   :  { %1995 = vrot.lane.b32.xlu0 %v1994_v11, %s3463_s3 }
0x1728   :  { %v1996_v45 = vpop.permute.xlu0 %1995 }
0x1729   :  { %2832 = vmatmul.mubr.msk.f32.vlgmr.msra.gmra.mrb[18].mxu0 %vm242_vm1, %v1996_v45 }
0x172a   :  { %3172 = vmatpush1.bf16.msra.mxu0 %v3936_v54  ;;  %2282 = vmatprep.mubr.f32.mxu0 %v3462_v6 }
0x172b   :  { %3174 = vmatprep.subr.bf16.mxu0 %v3940_v56 }
0x172e   :  { %3176 = vmatpush1.bf16.msra.mxu0 %v3960_v7 }
0x172f   :  { %3178 = vmatprep.subr.bf16.mxu0 %v3964_v8 }
0x1732   :  { %3180 = vmatpush1.bf16.msra.mxu0 %v3982_v17 }
0x1733   :  { %3182 = vmatprep.subr.bf16.mxu0 %v3986_v18 }
0x1736   :  { %3184 = vmatpush1.bf16.msra.mxu0 %v3999_v61 }
0x17fc   :  { %v2065_v33 = vpop.f32.mrb[18].mxu0 }
0x17fd   :  { %v2070_v14 = vadd.f32 %v2065_v33, %v4031_v21  ;;  %v2067_v46 = vpop.f32.mrb[19].mxu0 }
0x17fe   :  { %v2071_v48 = vadd.f32 %v2067_v46, %v4039_v47 }
0x17ff   :  { %v2833_v27 = vmul.f32 -1.442695, %v2070_v14 }
0x1800   :  { %v2834_v53 = vmul.f32 -1.442695, %v2071_v48 }
0x1801   :  { %3390 = vpow2.f32 %v2833_v27 }
0x1802   :  { %3392 = vtanh.f32 %v2071_v48 }
0x180b   :  { %v3391_v28 = vpop.eup %3390 }
0x180c   :  { %v2078_v9 = vadd.f32 1.0, %v3391_v28  ;;  %v3393_v30 = vpop.eup %3392 }
0x180e   :  { %3394 = vrcp.f32 %v2078_v9 }
0x180f   :  { %3396 = vpow2.f32 %v2834_v53 }
0x1818   :  { %v3395_v50 = vpop.eup %3394 }
0x1819   :  { %v2089_v51 = vmul.f32 %v3395_v50, %v3393_v30  ;;  %v2088_v10 = vmul.f32 %v3395_v50, %v2086_v49  ;;  %v3397_v63 = vpop.eup %3396 }
0x181a   :  { %v2079_v57 = vadd.f32 1.0, %v3397_v63 }
0x181b   :  { %2091 = vrot.lane.b32.xlu1 %v2089_v51, %s3463_s3 }
0x181c   :  { %3398 = vrcp.f32 %v2079_v57 }
0x1826   :  { %v3399_v4 = vpop.eup %3398 }
0x188d   :  { %v2092_v2 = vpop.permute.xlu1 %2091 }
0x188e   :  { %v2094_v3 = vadd.f32 %v2092_v2, %v2088_v10 }
0x1890   :  { %3400 = vtanh.f32 %v2094_v3 }
0x189a   :  { %v3401_v20 = vpop.eup %3400 }
0x189b   :  { %v2096_v12 = vmul.f32 %v3401_v20, %v3399_v4 }
0x189d   :  { %2104 = vrot.lane.b32.xlu0 %v2096_v12, %s3463_s3 }
0x190f   :  { %v2105_v55 = vpop.permute.xlu0 %2104 }
0x1910   :  { %2835 = vmatmul.mubr.msk.f32.vlgmr.msra.gmra.mrb[22].mxu1 %vm242_vm1, %v2105_v55 }
0x1911   :  { %3188 = vmatpush1.bf16.msra.mxu1 %v3936_v54  ;;  %2392 = vmatprep.mubr.f32.mxu1 %v3462_v6 }
0x1912   :  { %3190 = vmatprep.subr.bf16.mxu1 %v3940_v56 }
0x1915   :  { %3192 = vmatpush1.bf16.msra.mxu1 %v3960_v7 }
0x1916   :  { %3194 = vmatprep.subr.bf16.mxu1 %v3964_v8 }
0x1919   :  { %3196 = vmatpush1.bf16.msra.mxu1 %v3982_v17  ;;  %v2201_v17 = vrot.slane %v2094_v3, 6 }
0x191a   :  { %3198 = vmatprep.subr.bf16.mxu1 %v3986_v18 }
0x191d   :  { %3200 = vmatpush1.bf16.msra.mxu1 %v3999_v61 }
0x19e3   :  { %v2174_v62 = vpop.f32.mrb[22].mxu1 }
0x19e4   :  { %v2181_v13 = vrot.slane %v2174_v62, 6  ;;  %v2176_v15 = vpop.f32.mrb[23].mxu1 }
0x19e5   :  { %v2182_v19 = vrot.slane %v2176_v15, 6 }
0x19e6   :  { %v2185_v16 = vadd.f32 %v2181_v13, %v4025_v32 }
0x19e7   :  { %v2186_v56 = vadd.f32 %v2182_v19, %v4033_v26 }
0x19e8   :  { %v2836_v54 = vmul.f32 -1.442695, %v2185_v16  ;;  %v2433_v16 = vld [vmem:[%s4221_s9 + $0x8] sm:$0xff] }
0x19e9   :  { %v2837_v61 = vmul.f32 -1.442695, %v2186_v56 }
0x19ea   :  { %3402 = vpow2.f32 %v2836_v54  ;;  %v3465_v54 = vmov 0.0|0.0  }
0x19eb   :  { %3404 = vtanh.f32 %v2186_v56  ;;  %3201 = vmatprep.subr.bf16.mxu0 %v3465_v54  ;;  %v2435_v56 = vld [vmem:[%s4221_s9 + $0x18] sm:$0xff] }
0x19f4   :  { %v3403_v22 = vpop.eup %3402 }
0x19f5   :  { %v2193_v7 = vadd.f32 1.0, %v3403_v22  ;;  %v3405_v8 = vpop.eup %3404 }
0x19f7   :  { %3406 = vrcp.f32 %v2193_v7 }
0x19f8   :  { %3408 = vpow2.f32 %v2837_v61 }
0x1a01   :  { %v3407_v23 = vpop.eup %3406 }
0x1a02   :  { %v2204_v18 = vmul.f32 %v3407_v23, %v3405_v8  ;;  %v2203_v60 = vmul.f32 %v3407_v23, %v2201_v17  ;;  %v3409_v1 = vpop.eup %3408 }
0x1a03   :  { %v2194_v24 = vadd.f32 1.0, %v3409_v1 }
0x1a04   :  { %2206 = vrot.lane.b32.xlu1 %v2204_v18, %s3463_s3 }
0x1a05   :  { %3410 = vrcp.f32 %v2194_v24  ;;  %v2538_v24 = vrot.slane %v3856_v29, 7 }
0x1a0f   :  { %v3411_v37 = vpop.eup %3410 }
0x1a76   :  { %v2207_v0 = vpop.permute.xlu1 %2206 }
0x1a77   :  { %v2209_v34 = vadd.f32 %v2207_v0, %v2203_v60 }
0x1a79   :  { %3412 = vtanh.f32 %v2209_v34  ;;  %v2311_v11 = vrot.slane %v2209_v34, 6 }
0x1a83   :  { %v3413_v38 = vpop.eup %3412 }
0x1a84   :  { %v2211_v40 = vmul.f32 %v3413_v38, %v3411_v37 }
0x1a86   :  { %v2213_v41 = vrot.slane %v2211_v40, 2 }
0x1a88   :  { %2214 = vrot.lane.b32.xlu0 %v2213_v41, %s3463_s3 }
0x1afa   :  { %v2215_v42 = vpop.permute.xlu0 %2214 }
0x1afb   :  { %2838 = vmatmul.mubr.msk.f32.vlgmr.msra.gmra.mrb[20].mxu0 %vm242_vm1, %v2215_v42  ;;  %v2436_v42 = vld [vmem:[%s4221_s9 + $0x20] sm:$0xff] }
0x1afc   :  { %2877 = vmatprep.mubr.msk.f32.mxu0 %vm3466_vm6, %v3462_v6 }
0x1bce   :  { %v2284_v43 = vpop.f32.mrb[20].mxu0 }
0x1bcf   :  { %v2291_v25 = vrot.slane %v2284_v43, 4  ;;  %v2286_v52 = vpop.f32.mrb[21].mxu0  ;;  %v2437_v43 = vld [vmem:[%s4221_s9 + $0x28] sm:$0xff] }
0x1bd0   :  { %v2292_v59 = vrot.slane %v2286_v52, 4  ;;  %v3208_v29 = vpack.c.bf16 %v2437_v43, %v2436_v42 }
0x1bd1   :  { %v2295_v39 = vadd.f32 %v2291_v25, %v4031_v21  ;;  %v2439_v25 = vld [vmem:[%s4221_s9 + $0x38] sm:$0xff] }
0x1bd2   :  { %v2296_v31 = vadd.f32 %v2292_v59, %v4039_v47  ;;  %v2441_v59 = vld [vmem:[%s4221_s9 + $0x48] sm:$0xff] }
0x1bd3   :  { %v2839_v35 = vmul.f32 -1.442695, %v2295_v39 }
0x1bd4   :  { %v2840_v46 = vmul.f32 -1.442695, %v2296_v31 }
0x1bd5   :  { %3414 = vpow2.f32 %v2839_v35  ;;  %v2440_v35 = vld [vmem:[%s4221_s9 + $0x40] sm:$0xff] }
0x1bd6   :  { %3416 = vtanh.f32 %v2296_v31  ;;  %v3214_v31 = vpack.c.bf16 %v2441_v59, %v2440_v35 }
0x1bdf   :  { %v3415_v58 = vpop.eup %3414 }
0x1be0   :  { %v2303_v5 = vadd.f32 1.0, %v3415_v58  ;;  %v3417_v44 = vpop.eup %3416  ;;  %v2442_v58 = vld [vmem:[%s4221_s9 + $0x50] sm:$0xff] }
0x1be2   :  { %3418 = vrcp.f32 %v2303_v5  ;;  %v2443_v5 = vld [vmem:[%s4221_s9 + $0x58] sm:$0xff] }
0x1be3   :  { %3420 = vpow2.f32 %v2840_v46  ;;  %v2446_v46 = vld [vmem:[%s4221_s9 + $0x70] sm:$0xff] }
0x1bec   :  { %v3419_v45 = vpop.eup %3418 }
0x1bed   :  { %v2314_v33 = vmul.f32 %v3419_v45, %v3417_v44  ;;  %v2313_v14 = vmul.f32 %v3419_v45, %v2311_v11  ;;  %v3421_v27 = vpop.eup %3420  ;;  %v3217_v11 = vpack.c.bf16 %v2443_v5, %v2442_v58  ;;  %v2444_v45 = vld [vmem:[%s4221_s9 + $0x60] sm:$0xff] }
0x1bee   :  { %v2304_v21 = vadd.f32 1.0, %v3421_v27  ;;  %v2447_v27 = vld [vmem:[%s4221_s9 + $0x78] sm:$0xff] }
0x1bef   :  { %2316 = vrot.lane.b32.xlu1 %v2314_v33, %s3463_s3  ;;  %v2445_v33 = vld [vmem:[%s4221_s9 + $0x68] sm:$0xff] }
0x1bf0   :  { %3422 = vrcp.f32 %v2304_v21 }
0x1bfa   :  { %v3423_v47 = vpop.eup %3422 }
0x1c61   :  { %v2317_v48 = vpop.permute.xlu1 %2316 }
0x1c62   :  { %v2319_v28 = vadd.f32 %v2317_v48, %v2313_v14  ;;  %v3220_v14 = vpack.c.bf16 %v2445_v33, %v2444_v45  ;;  %v3223_v48 = vpack.c.bf16 %v2447_v27, %v2446_v46 }
0x1c64   :  { %3424 = vtanh.f32 %v2319_v28  ;;  %v2421_v55 = vrot.slane %v2319_v28, 6 }
0x1c6e   :  { %v3425_v9 = vpop.eup %3424 }
0x1c6f   :  { %v2321_v30 = vmul.f32 %v3425_v9, %v3423_v47  ;;  %v2844_v47 = vld [vmem:[%s4222_s10] ss:$0 sm:$0xff] }
0x1c71   :  { %v2323_v49 = vrot.slane %v2321_v30, 4 }
0x1c73   :  { %2324 = vrot.lane.b32.xlu0 %v2323_v49, %s3463_s3 }
0x1ce5   :  { %v2325_v50 = vpop.permute.xlu0 %2324 }
0x1ce6   :  { %2841 = vmatmul.mubr.msk.f32.vlgmr.msra.gmra.mrb[24].mxu1 %vm242_vm1, %v2325_v50 }
0x1db9   :  { %v2394_v51 = vpop.f32.mrb[24].mxu1 }
0x1dba   :  { %v2401_v10 = vrot.slane %v2394_v51, 2  ;;  %v2396_v53 = vpop.f32.mrb[25].mxu1 }
0x1dbb   :  { %v2402_v2 = vrot.slane %v2396_v53, 2 }
0x1dbc   :  { %v2405_v63 = vadd.f32 %v2401_v10, %v4025_v32  ;;  %v2432_v32 = vld [vmem:[%s4221_s9] sm:$0xff] }
0x1dbd   :  { %v2406_v3 = vadd.f32 %v2402_v2, %v4033_v26  ;;  %v2434_v26 = vld [vmem:[%s4221_s9 + $0x10] sm:$0xff]  ;;  %v3202_v19 = vpack.c.bf16 %v2433_v16, %v2432_v32 }
0x1dbe   :  { %v2842_v57 = vmul.f32 -1.442695, %v2405_v63  ;;  %v3205_v22 = vpack.c.bf16 %v2435_v56, %v2434_v26 }
0x1dbf   :  { %3203 = vmatpush3.bf16.msra.mxu0 %v3202_v19  ;;  %v2843_v7 = vmul.f32 -1.442695, %v2406_v3 }
0x1dc0   :  { %3426 = vpow2.f32 %v2842_v57  ;;  %3204 = vmatprep.subr.bf16.mxu0 %v3465_v54 }
0x1dc1   :  { %3428 = vtanh.f32 %v2406_v3 }
0x1dc3   :  { %3206 = vmatpush3.bf16.msra.mxu0 %v3205_v22 }
0x1dc4   :  { %3207 = vmatprep.subr.bf16.mxu0 %v3465_v54 }
0x1dca   :  { %v3427_v4 = vpop.eup %3426 }
0x1dcb   :  { %v2413_v20 = vadd.f32 1.0, %v3427_v4  ;;  %v3429_v12 = vpop.eup %3428 }
0x1dcd   :  { %3430 = vrcp.f32 %v2413_v20 }
0x1dce   :  { %3432 = vpow2.f32 %v2843_v7 }
0x1dd7   :  { %v3431_v62 = vpop.eup %3430 }
0x1dd8   :  { %v2424_v13 = vmul.f32 %v3431_v62, %v3429_v12  ;;  %v2423_v15 = vmul.f32 %v3431_v62, %v2421_v55  ;;  %v3433_v8 = vpop.eup %3432 }
0x1dd9   :  { %v2414_v17 = vadd.f32 1.0, %v3433_v8 }
0x1dda   :  { %2426 = vrot.lane.b32.xlu1 %v2424_v13, %s3463_s3 }
0x1ddb   :  { %3434 = vrcp.f32 %v2414_v17 }
0x1de5   :  { %v3435_v60 = vpop.eup %3434 }
0x1e4c   :  { %v2427_v23 = vpop.permute.xlu1 %2426 }
0x1e4d   :  { %v2429_v18 = vadd.f32 %v2427_v23, %v2423_v15 }
0x1e4f   :  { %3436 = vtanh.f32 %v2429_v18 }
0x1e59   :  { %v3437_v61 = vpop.eup %3436 }
0x1e5a   :  { %v2431_v1 = vmul.f32 %v3437_v61, %v3435_v60 }
0x1e5c   :  { %v2540_v0 = vrot.slane %v2431_v1, 6  ;;  %v2457_v34 = vrot.slane %v2431_v1, 5 }
0x1e5e   :  { %v2542_v37 = vsel %vm2459_vm7, %v2538_v24, %v2540_v0  ;;  %v2460_v38 = vsel %vm2459_vm7, %v1133_v36, %v2457_v34  ;;  %v2438_v36 = vld [vmem:[%s4221_s9 + $0x30] sm:$0xff]  ;;  %s2778_s9 = sshll.u32 %s3467_s29, 4  ;;  %s2779_s9 = int_to_ptr.vmem [resolvable:$true] %s2778_s9 }
0x1e5f   :  { %v2543_v40 = vmax.f32 %v2542_v37, 0.0  ;;  %v2461_v41 = vmax.f32 %v2460_v38, 0.0  ;;  %v3211_v39 = vpack.c.bf16 %v2439_v25, %v2438_v36  ;;  %s3438_s0 = scalar_lea.vmem %s2779_s9, 32  ;;  %p3443_p1 = scmp.lt.s32.totalorder %s2779_s9, %s2779_s9 }
0x1e60   :  { %p3439_p0 = scmp.ne.s32.totalorder %s2779_s9, %s3438_s0  ;;  %p3444_p2 = scmp.lt.s32.totalorder %s3438_s0, %s3438_s0 }
0x1e61   :  { %2545 = vrot.lane.b32.xlu1 %v2543_v40, %s3463_s3  ;;  %2463 = vrot.lane.b32.xlu0 %v2461_v41, %s3463_s3 }
0x1e62   :  { %p3445_p3 = por %p3444_p2, %p3443_p1 }
0x1e64   :  { %p3446_p4 = pnand %p3445_p3, %p3439_p0 }
0x1e65   :  { %2695 = vrot.lane.b32.xlu1 %v2543_v40, %s3464_s19  ;;  %2620 = vrot.lane.b32.xlu0 %v2461_v41, %s3464_s19 }
0x1ed3   :  { %v2464_v52 = vpop.permute.xlu0 %2463  ;;  %v2546_v44 = vpop.permute.xlu1 %2545 }
0x1ed4   :  { %2878 = vmatmul.mubr.msk.f32.vlgmr.msra.gmra.mrb[22].mxu0 %vm1192_vm5, %v2464_v52 }
0x1ed5   :  { %3209 = vmatpush3.bf16.msra.mxu0 %v3208_v29  ;;  %2888 = vmatprep.mubr.msk.f32.mxu0 %vm3466_vm6, %v3462_v6 }
0x1ed6   :  { %3210 = vmatprep.subr.bf16.mxu0 %v3465_v54 }
0x1ed7   :  { %v2621_v21 = vpop.permute.xlu0 %2620  ;;  %v2696_v28 = vpop.permute.xlu1 %2695 }
0x1ed9   :  { %3212 = vmatpush3.bf16.msra.mxu0 %v3211_v39 }
0x1eda   :  { %3213 = vmatprep.subr.bf16.mxu0 %v3465_v54 }
0x1edc   :  { %2889 = vmatmul.mubr.msk.f32.vlgmr.msra.gmra.mrb[22].mxu0 %vm1192_vm5, %v2546_v44 }
0x1edd   :  { %3215 = vmatpush3.bf16.msra.mxu0 %v3214_v31  ;;  %2899 = vmatprep.mubr.msk.f32.mxu0 %vm3466_vm6, %v3462_v6 }
0x1ede   :  { %3216 = vmatprep.subr.bf16.mxu0 %v3465_v54 }
0x1ee1   :  { %3218 = vmatpush3.bf16.msra.mxu0 %v3217_v11 }
0x1ee2   :  { %3219 = vmatprep.subr.bf16.mxu0 %v3465_v54 }
0x1ee4   :  { %2900 = vmatmul.mubr.msk.f32.vlgmr.msra.gmra.mrb[22].mxu0 %vm1192_vm5, %v2621_v21 }
0x1ee5   :  { %3221 = vmatpush3.bf16.msra.mxu0 %v3220_v14  ;;  %2910 = vmatprep.mubr.msk.f32.mxu0 %vm3466_vm6, %v3462_v6 }
0x1ee6   :  { %3222 = vmatprep.subr.bf16.mxu0 %v3465_v54 }
0x1ee9   :  { %3224 = vmatpush3.bf16.msra.mxu0 %v3223_v48 }
0x1eec   :  { %2911 = vmatmul.mubr.msk.f32.vlgmr.msra.gmra.mrb[22].mxu0 %vm1192_vm5, %v2696_v28 }
0x1fbf   :  { %v2765_v9 = vpop.f32.mrb[22].mxu0 }
0x1fc0   :  { %v3225_v30 = vadd.f32 %v2844_v47, %v2765_v9  ;;  %v2912_v49 = vpop.f32.mrb[23].mxu0 }
0x1fc2   :  { %2771 = vst.msk [vmem:[#allocation2] sm:$0x3] %vm2770_vm8, %v3225_v30 }
0x1fc3   :  { %3449 = shalt.err (!%p3446_p4)
}
0x1fc4   :  { %s3450_s2 = scalar_lea.hbm %s4223_s11, 32 }
0x1fc5   :  { %p3451_p5 = scmp.ne.s32.totalorder %s4223_s11, %s3450_s2  ;;  %p3454_p6 = scmp.lt.u32.totalorder %s3450_s2, %s4223_s11 }
0x1fc7   :  { %p3456_p7 = pnand %p3454_p6, %p3451_p5 }
0x1fc9   :  { %3459 = shalt.err (!%p3456_p7)
}
0x1fca   :  { %2781 = dma.vmem_to_hbm [thread:$0]  %s2779_s9, 32, %s4223_s11, [#allocation3]  }
0x1fcb   :  { %3460 = dma.done.wait [#allocation3], 32  }
0x1fcc   :  { %3461 = vsyncadd [#allocation3], 4294967264 }
0x1fcd   :  { %2785 = vsyncpa [#allocation3], 1 }

</bundles_post_ra>
